<compile_context>
chip_gen: v7x
topology: tpu7x:2x2x1
jax: 0.10.0
libtpu: 0.0.40
codegen_flags: <defaults>
</compile_context>

<pallas_src>
import functools

import jax
import jax.numpy as jnp
from jax.experimental import pallas as pl
from jax.experimental.pallas import tpu as pltpu


def decoder_kernel(x_ref, h0_ref, enc_ref, expand_ref, collapse_ref,
                   wih_ref, whh_ref, bih_ref, bhh_ref,
                   awh_ref, awe_ref, ab_ref, av_ref,
                   wafc_ref, wdfc_ref, wout_ref,
                   pred_ref, hnew_ref,
                   *, num_layers):
    """Single decode step: stacked GRU + Bahdanau attention + output projection.

    All weights arrive pre-transposed ([in, out]) and GRU gates pre-split, so the
    kernel issues only lane-aligned matmuls: no in-kernel transposes, no 3-D
    reshapes, no width-1 matvecs, and no per-batch Python loop.
    """
    x = x_ref[...]                                               # [B, emb]  (f32)

    # ---- stacked single-step GRU (PyTorch gate order: r, z, n) ----
    for l in range(num_layers):                                  # L static -> unrolled
        h_prev = h0_ref[l]                                       # [B, H]
        gi_r = jnp.dot(x, wih_ref[l, 0], preferred_element_type=jnp.float32) + bih_ref[l, 0]
        gi_z = jnp.dot(x, wih_ref[l, 1], preferred_element_type=jnp.float32) + bih_ref[l, 1]
        gi_n = jnp.dot(x, wih_ref[l, 2], preferred_element_type=jnp.float32) + bih_ref[l, 2]
        gh_r = jnp.dot(h_prev, whh_ref[l, 0], preferred_element_type=jnp.float32) + bhh_ref[l, 0]
        gh_z = jnp.dot(h_prev, whh_ref[l, 1], preferred_element_type=jnp.float32) + bhh_ref[l, 1]
        gh_n = jnp.dot(h_prev, whh_ref[l, 2], preferred_element_type=jnp.float32) + bhh_ref[l, 2]
        r = jax.nn.sigmoid(gi_r + gh_r)
        z = jax.nn.sigmoid(gi_z + gh_z)
        n = jnp.tanh(gi_n + r * gh_n)
        h_new = (1.0 - z) * n + z * h_prev
        # Safe with in-place aliasing: h0_ref[l] is read before hnew_ref[l] is
        # written, and later layers read strictly higher indices of h0_ref.
        hnew_ref[l] = h_new.astype(hnew_ref.dtype)
        x = h_new                                                # inter-layer dropout == identity
    h_last = x                                                   # [B, H]  == new hidden[-1]

    # ---- Bahdanau attention over encoder outputs, fully vectorized over B*S ----
    enc = enc_ref[...]                                           # [B*S, E] batch-major slab
    expand = expand_ref[...]                                     # [B*S, B] one-hot row->batch
    collapse = collapse_ref[...]                                 # [B, B*S] segment-sum matrix

    e_proj = jnp.dot(enc, awe_ref[...], preferred_element_type=jnp.float32)        # [B*S, H]
    hb = jnp.dot(h_last, awh_ref[...], preferred_element_type=jnp.float32) + ab_ref[...]   # [B, H]
    h_exp = jnp.dot(expand, hb, preferred_element_type=jnp.float32)                # [B*S, H]
    energy = jnp.tanh(e_proj + h_exp)                                              # [B*S, H]
    # score = energy . v done as VPU multiply + lane reduction (no N=1 matvec).
    scores = jnp.sum(energy * av_ref[...], axis=-1, keepdims=True)                 # [B*S, 1]

    # Globally-shifted softmax per batch segment; normalisation folded into the
    # weighted sum: weighted = (sum_s p*enc) / (sum_s p), both via one collapse
    # matmul each.
    m = jnp.max(scores, axis=0, keepdims=True)                                     # [1, 1]
    p = jnp.exp(scores - m)                                                        # [B*S, 1]
    num = jnp.dot(collapse, p * enc, preferred_element_type=jnp.float32)           # [B, E]
    den = jnp.dot(collapse, p, preferred_element_type=jnp.float32)                 # [B, 1]
    weighted = num / den                                                           # [B, E]

    # ---- attn_hidden = tanh(attention_fc(weighted) + decodetop_fc(hidden[-1])) ----
    attn_hidden = jnp.tanh(
        jnp.dot(weighted, wafc_ref[...], preferred_element_type=jnp.float32)
        + jnp.dot(h_last, wdfc_ref[...], preferred_element_type=jnp.float32))

    # ---- prediction = fc_out(attn_hidden) ----
    pred_ref[...] = jnp.dot(attn_hidden, wout_ref[...],
                            preferred_element_type=jnp.float32).astype(pred_ref.dtype)


def pack_decoder_weights(params):
    """One-time layout plumbing: pre-transpose every weight to [in, out] and split
    GRU gates so each gate matmul is a clean lane-aligned [B, H] tile."""
    L, three_h, _ = params["w_ih"].shape
    H = three_h // 3

    def split_gates_t(w):          # [L, 3H, in] -> [L, 3, in, H]
        lw, _, in_dim = w.shape
        return jnp.transpose(w.reshape(lw, 3, H, in_dim), (0, 1, 3, 2))

    def split_bias(b):             # [L, 1, 3H] -> [L, 3, 1, H]
        return b.reshape(b.shape[0], 3, 1, H)

    return {
        "embedding": params["embedding"],
        "w_ih": split_gates_t(params["w_ih"]),
        "w_hh": split_gates_t(params["w_hh"]),
        "b_ih": split_bias(params["b_ih"]),
        "b_hh": split_bias(params["b_hh"]),
        "attn_wh": params["attn_wh"].T,      # [H, H]
        "attn_we": params["attn_we"].T,      # [E, H]
        "attn_b": params["attn_b"],          # [1, H]
        "attn_v": params["attn_v"].T,        # [1, H]
        "w_att_fc": params["w_att_fc"].T,    # [E, H]
        "w_dec_fc": params["w_dec_fc"].T,    # [H, H]
        "w_out": params["w_out"].T,          # [H, out_dim]
    }


def decoder_forward(packed, input_ids, hidden, encoder_outputs):
    """Wrapper: embedding gather + batch-major flatten + constant segment
    matrices (all glue / layout plumbing), one Pallas call."""
    emb = packed["embedding"][input_ids]                         # [B, emb] gather = glue
    L, B, H = hidden.shape
    S, _, E = encoder_outputs.shape
    out_dim = packed["w_out"].shape[1]

    # Layout plumbing in the wrapper (pure XLA): batch-major 2-D encoder slab
    # plus the two constant segment matrices used in-kernel.
    enc_bm = jnp.transpose(encoder_outputs, (1, 0, 2)).reshape(B * S, E)
    expand = jnp.repeat(jnp.eye(B, dtype=jnp.float32), S, axis=0)   # [B*S, B]
    collapse = jnp.transpose(expand)                                # [B, B*S]

    kernel = functools.partial(decoder_kernel, num_layers=L)
    n_in = 16
    pred, h_new = pl.pallas_call(
        kernel,
        out_shape=(jax.ShapeDtypeStruct((B, out_dim), jnp.float32),
                   jax.ShapeDtypeStruct((L, B, H), jnp.float32)),
        in_specs=[pl.BlockSpec(memory_space=pltpu.MemorySpace.VMEM)] * n_in,
        out_specs=(pl.BlockSpec(memory_space=pltpu.MemorySpace.VMEM),
                   pl.BlockSpec(memory_space=pltpu.MemorySpace.VMEM)),
        input_output_aliases={1: 1},   # hidden (input 1) -> h_new (output 1), in place
    )(emb, hidden, enc_bm, expand, collapse,
      packed["w_ih"], packed["w_hh"], packed["b_ih"], packed["b_hh"],
      packed["attn_wh"], packed["attn_we"], packed["attn_b"], packed["attn_v"],
      packed["w_att_fc"], packed["w_dec_fc"], packed["w_out"])
    return pred, h_new


def decoder_forward_ref(params, input_ids, hidden, encoder_outputs):
    """Pure-JAX reference mirroring the PyTorch semantics (for verification)."""
    hp = jax.lax.Precision.HIGHEST
    x = params["embedding"][input_ids].astype(jnp.float32)
    L, B, H = hidden.shape
    new_h = []
    for l in range(L):
        h_prev = hidden[l]
        gi = jnp.dot(x, params["w_ih"][l].T, precision=hp) + params["b_ih"][l]
        gh = jnp.dot(h_prev, params["w_hh"][l].T, precision=hp) + params["b_hh"][l]
        r = jax.nn.sigmoid(gi[:, :H] + gh[:, :H])
        z = jax.nn.sigmoid(gi[:, H:2 * H] + gh[:, H:2 * H])
        n = jnp.tanh(gi[:, 2 * H:] + r * gh[:, 2 * H:])
        h_new = (1.0 - z) * n + z * h_prev
        new_h.append(h_new)
        x = h_new
    h_last = x
    enc = encoder_outputs
    S, _, E = enc.shape
    h_proj = jnp.dot(h_last, params["attn_wh"].T, precision=hp)
    e_proj = jnp.dot(enc.reshape(S * B, E), params["attn_we"].T,
                     precision=hp).reshape(S, B, H)
    energy = jnp.tanh(e_proj + h_proj[None] + params["attn_b"])
    scores = jnp.dot(energy.reshape(S * B, H), params["attn_v"],
                     precision=hp).reshape(S, B)
    a = jax.nn.softmax(scores, axis=0)
    weighted = jnp.sum(a[:, :, None] * enc, axis=0)
    attn_hidden = jnp.tanh(jnp.dot(weighted, params["w_att_fc"].T, precision=hp)
                           + jnp.dot(h_last, params["w_dec_fc"].T, precision=hp))
    pred = jnp.dot(attn_hidden, params["w_out"].T, precision=hp)
    return pred, jnp.stack(new_h, axis=0)


def init_params(key, output_dim, emb_dim, enc_hid_dim, dec_hid_dim, num_layers):
    assert emb_dim == dec_hid_dim, "stacked GRU weights packed as one array"
    ks = jax.random.split(key, 12)
    s = 0.1
    H = dec_hid_dim
    return {
        "embedding": s * jax.random.normal(ks[0], (output_dim, emb_dim), jnp.float32),
        "w_ih": s * jax.random.normal(ks[1], (num_layers, 3 * H, emb_dim), jnp.float32),
        "w_hh": s * jax.random.normal(ks[2], (num_layers, 3 * H, H), jnp.float32),
        "b_ih": s * jax.random.normal(ks[3], (num_layers, 1, 3 * H), jnp.float32),
        "b_hh": s * jax.random.normal(ks[4], (num_layers, 1, 3 * H), jnp.float32),
        "attn_wh": s * jax.random.normal(ks[5], (H, H), jnp.float32),
        "attn_we": s * jax.random.normal(ks[6], (H, enc_hid_dim), jnp.float32),
        "attn_b": s * jax.random.normal(ks[7], (1, H), jnp.float32),
        "attn_v": s * jax.random.normal(ks[8], (H, 1), jnp.float32),
        "w_att_fc": s * jax.random.normal(ks[9], (H, enc_hid_dim), jnp.float32),
        "w_dec_fc": s * jax.random.normal(ks[10], (H, H), jnp.float32),
        "w_out": s * jax.random.normal(ks[11], (output_dim, H), jnp.float32),
    }


if __name__ == "__main__":
    output_dim, emb_dim, enc_hid_dim, dec_hid_dim = 64, 32, 32, 32
    num_layers, batch, src_len = 2, 2, 8

    key = jax.random.PRNGKey(0)
    kp, k1, k2, k3 = jax.random.split(key, 4)
    params = init_params(kp, output_dim, emb_dim, enc_hid_dim, dec_hid_dim, num_layers)
    packed = pack_decoder_weights(params)   # one-time pre-transpose / gate split

    input_ids = jax.random.randint(k1, (batch,), 0, output_dim, dtype=jnp.int32)
    hidden = 0.1 * jax.random.normal(k2, (num_layers, batch, dec_hid_dim), jnp.float32)
    encoder_outputs = 0.1 * jax.random.normal(k3, (src_len, batch, enc_hid_dim), jnp.float32)

    pred, h_new = decoder_forward(packed, input_ids, hidden, encoder_outputs)
    jax.block_until_ready((pred, h_new))

    pred_ref, h_ref = decoder_forward_ref(params, input_ids, hidden, encoder_outputs)
    assert pred.shape == (batch, output_dim) and h_new.shape == (num_layers, batch, dec_hid_dim)
    assert jnp.allclose(pred, pred_ref, atol=1e-3, rtol=1e-3)
    assert jnp.allclose(h_new, h_ref, atol=1e-3, rtol=1e-3)

    print("KERNEL_OK")
</pallas_src>

<mosaic_0001>
module attributes {stable_mosaic.version = 11 : i64} {
  func.func @decoder_kernel(%arg0: memref<2x32xf32, #tpu.memory_space<vmem>>, %arg1: memref<2x2x32xf32, #tpu.memory_space<vmem>>, %arg2: memref<16x32xf32, #tpu.memory_space<vmem>>, %arg3: memref<16x2xf32, #tpu.memory_space<vmem>>, %arg4: memref<2x16xf32, #tpu.memory_space<vmem>>, %arg5: memref<2x3x32x32xf32, #tpu.memory_space<vmem>>, %arg6: memref<2x3x32x32xf32, #tpu.memory_space<vmem>>, %arg7: memref<2x3x1x32xf32, #tpu.memory_space<vmem>>, %arg8: memref<2x3x1x32xf32, #tpu.memory_space<vmem>>, %arg9: memref<32x32xf32, #tpu.memory_space<vmem>>, %arg10: memref<32x32xf32, #tpu.memory_space<vmem>>, %arg11: memref<1x32xf32, #tpu.memory_space<vmem>>, %arg12: memref<1x32xf32, #tpu.memory_space<vmem>>, %arg13: memref<32x32xf32, #tpu.memory_space<vmem>>, %arg14: memref<32x32xf32, #tpu.memory_space<vmem>>, %arg15: memref<32x64xf32, #tpu.memory_space<vmem>>, %arg16: memref<2x64xf32, #tpu.memory_space<vmem>>, %arg17: memref<2x2x32xf32, #tpu.memory_space<vmem>>) attributes {dimension_semantics = [], scalar_prefetch = 0 : i64, scratch_operands = 0 : i64, tpu.core_type = #tpu.core_type<tc>} {
    %c0 = arith.constant 0 : index
    %c0_0 = arith.constant 0 : index
    %0 = vector.load %arg0[%c0, %c0_0] : memref<2x32xf32, #tpu.memory_space<vmem>>, vector<2x32xf32>
    %c0_1 = arith.constant 0 : index
    %c0_2 = arith.constant 0 : index
    %c0_3 = arith.constant 0 : index
    %1 = vector.load %arg1[%c0_1, %c0_2, %c0_3] : memref<2x2x32xf32, #tpu.memory_space<vmem>>, vector<1x2x32xf32>
    %2 = vector.shape_cast %1 : vector<1x2x32xf32> to vector<2x32xf32>
    %c0_4 = arith.constant 0 : index
    %c0_5 = arith.constant 0 : index
    %c0_6 = arith.constant 0 : index
    %c0_7 = arith.constant 0 : index
    %3 = vector.load %arg5[%c0_4, %c0_5, %c0_6, %c0_7] : memref<2x3x32x32xf32, #tpu.memory_space<vmem>>, vector<1x1x32x32xf32>
    %4 = vector.shape_cast %3 : vector<1x1x32x32xf32> to vector<32x32xf32>
    %cst = arith.constant dense<0.000000e+00> : vector<2x32xf32>
    %5 = tpu.matmul %0, %4, %cst {dimension_numbers = #tpu.dot_dimension_numbers<[1], [0], [0], [1], [0, 0, 1, 1], [], []>} : vector<2x32xf32>, vector<32x32xf32>, vector<2x32xf32> -> vector<2x32xf32>
    %c0_8 = arith.constant 0 : index
    %c0_9 = arith.constant 0 : index
    %c0_10 = arith.constant 0 : index
    %c0_11 = arith.constant 0 : index
    %6 = vector.load %arg7[%c0_8, %c0_9, %c0_10, %c0_11] : memref<2x3x1x32xf32, #tpu.memory_space<vmem>>, vector<1x1x1x32xf32>
    %7 = vector.shape_cast %6 : vector<1x1x1x32xf32> to vector<1x32xf32>
    %8 = vector.broadcast %7 : vector<1x32xf32> to vector<2x32xf32>
    %9 = arith.addf %5, %8 : vector<2x32xf32>
    %c0_12 = arith.constant 0 : index
    %c1 = arith.constant 1 : index
    %c0_13 = arith.constant 0 : index
    %c0_14 = arith.constant 0 : index
    %10 = vector.load %arg5[%c0_12, %c1, %c0_13, %c0_14] : memref<2x3x32x32xf32, #tpu.memory_space<vmem>>, vector<1x1x32x32xf32>
    %11 = vector.shape_cast %10 : vector<1x1x32x32xf32> to vector<32x32xf32>
    %cst_15 = arith.constant dense<0.000000e+00> : vector<2x32xf32>
    %12 = tpu.matmul %0, %11, %cst_15 {dimension_numbers = #tpu.dot_dimension_numbers<[1], [0], [0], [1], [0, 0, 1, 1], [], []>} : vector<2x32xf32>, vector<32x32xf32>, vector<2x32xf32> -> vector<2x32xf32>
    %c0_16 = arith.constant 0 : index
    %c1_17 = arith.constant 1 : index
    %c0_18 = arith.constant 0 : index
    %c0_19 = arith.constant 0 : index
    %13 = vector.load %arg7[%c0_16, %c1_17, %c0_18, %c0_19] : memref<2x3x1x32xf32, #tpu.memory_space<vmem>>, vector<1x1x1x32xf32>
    %14 = vector.shape_cast %13 : vector<1x1x1x32xf32> to vector<1x32xf32>
    %15 = vector.broadcast %14 : vector<1x32xf32> to vector<2x32xf32>
    %16 = arith.addf %12, %15 : vector<2x32xf32>
    %c0_20 = arith.constant 0 : index
    %c2 = arith.constant 2 : index
    %c0_21 = arith.constant 0 : index
    %c0_22 = arith.constant 0 : index
    %17 = vector.load %arg5[%c0_20, %c2, %c0_21, %c0_22] : memref<2x3x32x32xf32, #tpu.memory_space<vmem>>, vector<1x1x32x32xf32>
    %18 = vector.shape_cast %17 : vector<1x1x32x32xf32> to vector<32x32xf32>
    %cst_23 = arith.constant dense<0.000000e+00> : vector<2x32xf32>
    %19 = tpu.matmul %0, %18, %cst_23 {dimension_numbers = #tpu.dot_dimension_numbers<[1], [0], [0], [1], [0, 0, 1, 1], [], []>} : vector<2x32xf32>, vector<32x32xf32>, vector<2x32xf32> -> vector<2x32xf32>
    %c0_24 = arith.constant 0 : index
    %c2_25 = arith.constant 2 : index
    %c0_26 = arith.constant 0 : index
    %c0_27 = arith.constant 0 : index
    %20 = vector.load %arg7[%c0_24, %c2_25, %c0_26, %c0_27] : memref<2x3x1x32xf32, #tpu.memory_space<vmem>>, vector<1x1x1x32xf32>
    %21 = vector.shape_cast %20 : vector<1x1x1x32xf32> to vector<1x32xf32>
    %22 = vector.broadcast %21 : vector<1x32xf32> to vector<2x32xf32>
    %23 = arith.addf %19, %22 : vector<2x32xf32>
    %c0_28 = arith.constant 0 : index
    %c0_29 = arith.constant 0 : index
    %c0_30 = arith.constant 0 : index
    %c0_31 = arith.constant 0 : index
    %24 = vector.load %arg6[%c0_28, %c0_29, %c0_30, %c0_31] : memref<2x3x32x32xf32, #tpu.memory_space<vmem>>, vector<1x1x32x32xf32>
    %25 = vector.shape_cast %24 : vector<1x1x32x32xf32> to vector<32x32xf32>
    %cst_32 = arith.constant dense<0.000000e+00> : vector<2x32xf32>
    %26 = tpu.matmul %2, %25, %cst_32 {dimension_numbers = #tpu.dot_dimension_numbers<[1], [0], [0], [1], [0, 0, 1, 1], [], []>} : vector<2x32xf32>, vector<32x32xf32>, vector<2x32xf32> -> vector<2x32xf32>
    %c0_33 = arith.constant 0 : index
    %c0_34 = arith.constant 0 : index
    %c0_35 = arith.constant 0 : index
    %c0_36 = arith.constant 0 : index
    %27 = vector.load %arg8[%c0_33, %c0_34, %c0_35, %c0_36] : memref<2x3x1x32xf32, #tpu.memory_space<vmem>>, vector<1x1x1x32xf32>
    %28 = vector.shape_cast %27 : vector<1x1x1x32xf32> to vector<1x32xf32>
    %29 = vector.broadcast %28 : vector<1x32xf32> to vector<2x32xf32>
    %30 = arith.addf %26, %29 : vector<2x32xf32>
    %c0_37 = arith.constant 0 : index
    %c1_38 = arith.constant 1 : index
    %c0_39 = arith.constant 0 : index
    %c0_40 = arith.constant 0 : index
    %31 = vector.load %arg6[%c0_37, %c1_38, %c0_39, %c0_40] : memref<2x3x32x32xf32, #tpu.memory_space<vmem>>, vector<1x1x32x32xf32>
    %32 = vector.shape_cast %31 : vector<1x1x32x32xf32> to vector<32x32xf32>
    %cst_41 = arith.constant dense<0.000000e+00> : vector<2x32xf32>
    %33 = tpu.matmul %2, %32, %cst_41 {dimension_numbers = #tpu.dot_dimension_numbers<[1], [0], [0], [1], [0, 0, 1, 1], [], []>} : vector<2x32xf32>, vector<32x32xf32>, vector<2x32xf32> -> vector<2x32xf32>
    %c0_42 = arith.constant 0 : index
    %c1_43 = arith.constant 1 : index
    %c0_44 = arith.constant 0 : index
    %c0_45 = arith.constant 0 : index
    %34 = vector.load %arg8[%c0_42, %c1_43, %c0_44, %c0_45] : memref<2x3x1x32xf32, #tpu.memory_space<vmem>>, vector<1x1x1x32xf32>
    %35 = vector.shape_cast %34 : vector<1x1x1x32xf32> to vector<1x32xf32>
    %36 = vector.broadcast %35 : vector<1x32xf32> to vector<2x32xf32>
    %37 = arith.addf %33, %36 : vector<2x32xf32>
    %c0_46 = arith.constant 0 : index
    %c2_47 = arith.constant 2 : index
    %c0_48 = arith.constant 0 : index
    %c0_49 = arith.constant 0 : index
    %38 = vector.load %arg6[%c0_46, %c2_47, %c0_48, %c0_49] : memref<2x3x32x32xf32, #tpu.memory_space<vmem>>, vector<1x1x32x32xf32>
    %39 = vector.shape_cast %38 : vector<1x1x32x32xf32> to vector<32x32xf32>
    %cst_50 = arith.constant dense<0.000000e+00> : vector<2x32xf32>
    %40 = tpu.matmul %2, %39, %cst_50 {dimension_numbers = #tpu.dot_dimension_numbers<[1], [0], [0], [1], [0, 0, 1, 1], [], []>} : vector<2x32xf32>, vector<32x32xf32>, vector<2x32xf32> -> vector<2x32xf32>
    %c0_51 = arith.constant 0 : index
    %c2_52 = arith.constant 2 : index
    %c0_53 = arith.constant 0 : index
    %c0_54 = arith.constant 0 : index
    %41 = vector.load %arg8[%c0_51, %c2_52, %c0_53, %c0_54] : memref<2x3x1x32xf32, #tpu.memory_space<vmem>>, vector<1x1x1x32xf32>
    %42 = vector.shape_cast %41 : vector<1x1x1x32xf32> to vector<1x32xf32>
    %43 = vector.broadcast %42 : vector<1x32xf32> to vector<2x32xf32>
    %44 = arith.addf %40, %43 : vector<2x32xf32>
    %45 = arith.addf %9, %30 : vector<2x32xf32>
    %46 = arith.negf %45 : vector<2x32xf32>
    %47 = math.exp %46 : vector<2x32xf32>
    %cst_55 = arith.constant 1.000000e+00 : f32
    %48 = vector.broadcast %cst_55 : f32 to vector<2x32xf32>
    %49 = arith.addf %48, %47 : vector<2x32xf32>
    %50 = arith.divf %48, %49 : vector<2x32xf32>
    %51 = arith.addf %16, %37 : vector<2x32xf32>
    %52 = arith.negf %51 : vector<2x32xf32>
    %53 = math.exp %52 : vector<2x32xf32>
    %cst_56 = arith.constant 1.000000e+00 : f32
    %54 = vector.broadcast %cst_56 : f32 to vector<2x32xf32>
    %55 = arith.addf %54, %53 : vector<2x32xf32>
    %56 = arith.divf %54, %55 : vector<2x32xf32>
    %57 = arith.mulf %50, %44 : vector<2x32xf32>
    %58 = arith.addf %23, %57 : vector<2x32xf32>
    %59 = math.tanh %58 : vector<2x32xf32>
    %cst_57 = arith.constant 1.000000e+00 : f32
    %60 = vector.broadcast %cst_57 : f32 to vector<2x32xf32>
    %61 = arith.subf %60, %56 : vector<2x32xf32>
    %62 = arith.mulf %61, %59 : vector<2x32xf32>
    %63 = arith.mulf %56, %2 : vector<2x32xf32>
    %64 = arith.addf %62, %63 : vector<2x32xf32>
    %c0_58 = arith.constant 0 : index
    %c0_59 = arith.constant 0 : index
    %c0_60 = arith.constant 0 : index
    %65 = vector.load %arg17[%c0_58, %c0_59, %c0_60] : memref<2x2x32xf32, #tpu.memory_space<vmem>>, vector<1x2x32xf32>
    %66 = vector.shape_cast %65 : vector<1x2x32xf32> to vector<2x32xf32>
    %67 = vector.shape_cast %64 : vector<2x32xf32> to vector<1x2x32xf32>
    tpu.vector_store %arg17[%c0_58, %c0_59, %c0_60], %67 {strides = array<i32>} : memref<2x2x32xf32, #tpu.memory_space<vmem>>, vector<1x2x32xf32>,
    %c1_61 = arith.constant 1 : index
    %c0_62 = arith.constant 0 : index
    %c0_63 = arith.constant 0 : index
    %68 = vector.load %arg1[%c1_61, %c0_62, %c0_63] : memref<2x2x32xf32, #tpu.memory_space<vmem>>, vector<1x2x32xf32>
    %69 = vector.shape_cast %68 : vector<1x2x32xf32> to vector<2x32xf32>
    %c1_64 = arith.constant 1 : index
    %c0_65 = arith.constant 0 : index
    %c0_66 = arith.constant 0 : index
    %c0_67 = arith.constant 0 : index
    %70 = vector.load %arg5[%c1_64, %c0_65, %c0_66, %c0_67] : memref<2x3x32x32xf32, #tpu.memory_space<vmem>>, vector<1x1x32x32xf32>
    %71 = vector.shape_cast %70 : vector<1x1x32x32xf32> to vector<32x32xf32>
    %cst_68 = arith.constant dense<0.000000e+00> : vector<2x32xf32>
    %72 = tpu.matmul %64, %71, %cst_68 {dimension_numbers = #tpu.dot_dimension_numbers<[1], [0], [0], [1], [0, 0, 1, 1], [], []>} : vector<2x32xf32>, vector<32x32xf32>, vector<2x32xf32> -> vector<2x32xf32>
    %c1_69 = arith.constant 1 : index
    %c0_70 = arith.constant 0 : index
    %c0_71 = arith.constant 0 : index
    %c0_72 = arith.constant 0 : index
    %73 = vector.load %arg7[%c1_69, %c0_70, %c0_71, %c0_72] : memref<2x3x1x32xf32, #tpu.memory_space<vmem>>, vector<1x1x1x32xf32>
    %74 = vector.shape_cast %73 : vector<1x1x1x32xf32> to vector<1x32xf32>
    %75 = vector.broadcast %74 : vector<1x32xf32> to vector<2x32xf32>
    %76 = arith.addf %72, %75 : vector<2x32xf32>
    %c1_73 = arith.constant 1 : index
    %c1_74 = arith.constant 1 : index
    %c0_75 = arith.constant 0 : index
    %c0_76 = arith.constant 0 : index
    %77 = vector.load %arg5[%c1_73, %c1_74, %c0_75, %c0_76] : memref<2x3x32x32xf32, #tpu.memory_space<vmem>>, vector<1x1x32x32xf32>
    %78 = vector.shape_cast %77 : vector<1x1x32x32xf32> to vector<32x32xf32>
    %cst_77 = arith.constant dense<0.000000e+00> : vector<2x32xf32>
    %79 = tpu.matmul %64, %78, %cst_77 {dimension_numbers = #tpu.dot_dimension_numbers<[1], [0], [0], [1], [0, 0, 1, 1], [], []>} : vector<2x32xf32>, vector<32x32xf32>, vector<2x32xf32> -> vector<2x32xf32>
    %c1_78 = arith.constant 1 : index
    %c1_79 = arith.constant 1 : index
    %c0_80 = arith.constant 0 : index
    %c0_81 = arith.constant 0 : index
    %80 = vector.load %arg7[%c1_78, %c1_79, %c0_80, %c0_81] : memref<2x3x1x32xf32, #tpu.memory_space<vmem>>, vector<1x1x1x32xf32>
    %81 = vector.shape_cast %80 : vector<1x1x1x32xf32> to vector<1x32xf32>
    %82 = vector.broadcast %81 : vector<1x32xf32> to vector<2x32xf32>
    %83 = arith.addf %79, %82 : vector<2x32xf32>
    %c1_82 = arith.constant 1 : index
    %c2_83 = arith.constant 2 : index
    %c0_84 = arith.constant 0 : index
    %c0_85 = arith.constant 0 : index
    %84 = vector.load %arg5[%c1_82, %c2_83, %c0_84, %c0_85] : memref<2x3x32x32xf32, #tpu.memory_space<vmem>>, vector<1x1x32x32xf32>
    %85 = vector.shape_cast %84 : vector<1x1x32x32xf32> to vector<32x32xf32>
    %cst_86 = arith.constant dense<0.000000e+00> : vector<2x32xf32>
    %86 = tpu.matmul %64, %85, %cst_86 {dimension_numbers = #tpu.dot_dimension_numbers<[1], [0], [0], [1], [0, 0, 1, 1], [], []>} : vector<2x32xf32>, vector<32x32xf32>, vector<2x32xf32> -> vector<2x32xf32>
    %c1_87 = arith.constant 1 : index
    %c2_88 = arith.constant 2 : index
    %c0_89 = arith.constant 0 : index
    %c0_90 = arith.constant 0 : index
    %87 = vector.load %arg7[%c1_87, %c2_88, %c0_89, %c0_90] : memref<2x3x1x32xf32, #tpu.memory_space<vmem>>, vector<1x1x1x32xf32>
    %88 = vector.shape_cast %87 : vector<1x1x1x32xf32> to vector<1x32xf32>
    %89 = vector.broadcast %88 : vector<1x32xf32> to vector<2x32xf32>
    %90 = arith.addf %86, %89 : vector<2x32xf32>
    %c1_91 = arith.constant 1 : index
    %c0_92 = arith.constant 0 : index
    %c0_93 = arith.constant 0 : index
    %c0_94 = arith.constant 0 : index
    %91 = vector.load %arg6[%c1_91, %c0_92, %c0_93, %c0_94] : memref<2x3x32x32xf32, #tpu.memory_space<vmem>>, vector<1x1x32x32xf32>
    %92 = vector.shape_cast %91 : vector<1x1x32x32xf32> to vector<32x32xf32>
    %cst_95 = arith.constant dense<0.000000e+00> : vector<2x32xf32>
    %93 = tpu.matmul %69, %92, %cst_95 {dimension_numbers = #tpu.dot_dimension_numbers<[1], [0], [0], [1], [0, 0, 1, 1], [], []>} : vector<2x32xf32>, vector<32x32xf32>, vector<2x32xf32> -> vector<2x32xf32>
    %c1_96 = arith.constant 1 : index
    %c0_97 = arith.constant 0 : index
    %c0_98 = arith.constant 0 : index
    %c0_99 = arith.constant 0 : index
    %94 = vector.load %arg8[%c1_96, %c0_97, %c0_98, %c0_99] : memref<2x3x1x32xf32, #tpu.memory_space<vmem>>, vector<1x1x1x32xf32>
    %95 = vector.shape_cast %94 : vector<1x1x1x32xf32> to vector<1x32xf32>
    %96 = vector.broadcast %95 : vector<1x32xf32> to vector<2x32xf32>
    %97 = arith.addf %93, %96 : vector<2x32xf32>
    %c1_100 = arith.constant 1 : index
    %c1_101 = arith.constant 1 : index
    %c0_102 = arith.constant 0 : index
    %c0_103 = arith.constant 0 : index
    %98 = vector.load %arg6[%c1_100, %c1_101, %c0_102, %c0_103] : memref<2x3x32x32xf32, #tpu.memory_space<vmem>>, vector<1x1x32x32xf32>
    %99 = vector.shape_cast %98 : vector<1x1x32x32xf32> to vector<32x32xf32>
    %cst_104 = arith.constant dense<0.000000e+00> : vector<2x32xf32>
    %100 = tpu.matmul %69, %99, %cst_104 {dimension_numbers = #tpu.dot_dimension_numbers<[1], [0], [0], [1], [0, 0, 1, 1], [], []>} : vector<2x32xf32>, vector<32x32xf32>, vector<2x32xf32> -> vector<2x32xf32>
    %c1_105 = arith.constant 1 : index
    %c1_106 = arith.constant 1 : index
    %c0_107 = arith.constant 0 : index
    %c0_108 = arith.constant 0 : index
    %101 = vector.load %arg8[%c1_105, %c1_106, %c0_107, %c0_108] : memref<2x3x1x32xf32, #tpu.memory_space<vmem>>, vector<1x1x1x32xf32>
    %102 = vector.shape_cast %101 : vector<1x1x1x32xf32> to vector<1x32xf32>
    %103 = vector.broadcast %102 : vector<1x32xf32> to vector<2x32xf32>
    %104 = arith.addf %100, %103 : vector<2x32xf32>
    %c1_109 = arith.constant 1 : index
    %c2_110 = arith.constant 2 : index
    %c0_111 = arith.constant 0 : index
    %c0_112 = arith.constant 0 : index
    %105 = vector.load %arg6[%c1_109, %c2_110, %c0_111, %c0_112] : memref<2x3x32x32xf32, #tpu.memory_space<vmem>>, vector<1x1x32x32xf32>
    %106 = vector.shape_cast %105 : vector<1x1x32x32xf32> to vector<32x32xf32>
    %cst_113 = arith.constant dense<0.000000e+00> : vector<2x32xf32>
    %107 = tpu.matmul %69, %106, %cst_113 {dimension_numbers = #tpu.dot_dimension_numbers<[1], [0], [0], [1], [0, 0, 1, 1], [], []>} : vector<2x32xf32>, vector<32x32xf32>, vector<2x32xf32> -> vector<2x32xf32>
    %c1_114 = arith.constant 1 : index
    %c2_115 = arith.constant 2 : index
    %c0_116 = arith.constant 0 : index
    %c0_117 = arith.constant 0 : index
    %108 = vector.load %arg8[%c1_114, %c2_115, %c0_116, %c0_117] : memref<2x3x1x32xf32, #tpu.memory_space<vmem>>, vector<1x1x1x32xf32>
    %109 = vector.shape_cast %108 : vector<1x1x1x32xf32> to vector<1x32xf32>
    %110 = vector.broadcast %109 : vector<1x32xf32> to vector<2x32xf32>
    %111 = arith.addf %107, %110 : vector<2x32xf32>
    %112 = arith.addf %76, %97 : vector<2x32xf32>
    %113 = arith.negf %112 : vector<2x32xf32>
    %114 = math.exp %113 : vector<2x32xf32>
    %cst_118 = arith.constant 1.000000e+00 : f32
    %115 = vector.broadcast %cst_118 : f32 to vector<2x32xf32>
    %116 = arith.addf %115, %114 : vector<2x32xf32>
    %117 = arith.divf %115, %116 : vector<2x32xf32>
    %118 = arith.addf %83, %104 : vector<2x32xf32>
    %119 = arith.negf %118 : vector<2x32xf32>
    %120 = math.exp %119 : vector<2x32xf32>
    %cst_119 = arith.constant 1.000000e+00 : f32
    %121 = vector.broadcast %cst_119 : f32 to vector<2x32xf32>
    %122 = arith.addf %121, %120 : vector<2x32xf32>
    %123 = arith.divf %121, %122 : vector<2x32xf32>
    %124 = arith.mulf %117, %111 : vector<2x32xf32>
    %125 = arith.addf %90, %124 : vector<2x32xf32>
    %126 = math.tanh %125 : vector<2x32xf32>
    %cst_120 = arith.constant 1.000000e+00 : f32
    %127 = vector.broadcast %cst_120 : f32 to vector<2x32xf32>
    %128 = arith.subf %127, %123 : vector<2x32xf32>
    %129 = arith.mulf %128, %126 : vector<2x32xf32>
    %130 = arith.mulf %123, %69 : vector<2x32xf32>
    %131 = arith.addf %129, %130 : vector<2x32xf32>
    %c1_121 = arith.constant 1 : index
    %c0_122 = arith.constant 0 : index
    %c0_123 = arith.constant 0 : index
    %132 = vector.load %arg17[%c1_121, %c0_122, %c0_123] : memref<2x2x32xf32, #tpu.memory_space<vmem>>, vector<1x2x32xf32>
    %133 = vector.shape_cast %132 : vector<1x2x32xf32> to vector<2x32xf32>
    %134 = vector.shape_cast %131 : vector<2x32xf32> to vector<1x2x32xf32>
    tpu.vector_store %arg17[%c1_121, %c0_122, %c0_123], %134 {strides = array<i32>} : memref<2x2x32xf32, #tpu.memory_space<vmem>>, vector<1x2x32xf32>,
    %c0_124 = arith.constant 0 : index
    %c0_125 = arith.constant 0 : index
    %135 = vector.load %arg2[%c0_124, %c0_125] : memref<16x32xf32, #tpu.memory_space<vmem>>, vector<16x32xf32>
    %c0_126 = arith.constant 0 : index
    %c0_127 = arith.constant 0 : index
    %136 = vector.load %arg3[%c0_126, %c0_127] : memref<16x2xf32, #tpu.memory_space<vmem>>, vector<16x2xf32>
    %c0_128 = arith.constant 0 : index
    %c0_129 = arith.constant 0 : index
    %137 = vector.load %arg4[%c0_128, %c0_129] : memref<2x16xf32, #tpu.memory_space<vmem>>, vector<2x16xf32>
    %c0_130 = arith.constant 0 : index
    %c0_131 = arith.constant 0 : index
    %138 = vector.load %arg10[%c0_130, %c0_131] : memref<32x32xf32, #tpu.memory_space<vmem>>, vector<32x32xf32>
    %cst_132 = arith.constant dense<0.000000e+00> : vector<16x32xf32>
    %139 = tpu.matmul %135, %138, %cst_132 {dimension_numbers = #tpu.dot_dimension_numbers<[1], [0], [0], [1], [0, 0, 1, 1], [], []>} : vector<16x32xf32>, vector<32x32xf32>, vector<16x32xf32> -> vector<16x32xf32>
    %c0_133 = arith.constant 0 : index
    %c0_134 = arith.constant 0 : index
    %140 = vector.load %arg9[%c0_133, %c0_134] : memref<32x32xf32, #tpu.memory_space<vmem>>, vector<32x32xf32>
    %cst_135 = arith.constant dense<0.000000e+00> : vector<2x32xf32>
    %141 = tpu.matmul %131, %140, %cst_135 {dimension_numbers = #tpu.dot_dimension_numbers<[1], [0], [0], [1], [0, 0, 1, 1], [], []>} : vector<2x32xf32>, vector<32x32xf32>, vector<2x32xf32> -> vector<2x32xf32>
    %c0_136 = arith.constant 0 : index
    %c0_137 = arith.constant 0 : index
    %142 = vector.load %arg11[%c0_136, %c0_137] : memref<1x32xf32, #tpu.memory_space<vmem>>, vector<1x32xf32>
    %143 = vector.broadcast %142 : vector<1x32xf32> to vector<2x32xf32>
    %144 = arith.addf %141, %143 : vector<2x32xf32>
    %cst_138 = arith.constant dense<0.000000e+00> : vector<16x32xf32>
    %145 = tpu.matmul %136, %144, %cst_138 {dimension_numbers = #tpu.dot_dimension_numbers<[1], [0], [0], [1], [0, 0, 1, 1], [], []>} : vector<16x2xf32>, vector<2x32xf32>, vector<16x32xf32> -> vector<16x32xf32>
    %146 = arith.addf %139, %145 : vector<16x32xf32>
    %147 = math.tanh %146 : vector<16x32xf32>
    %c0_139 = arith.constant 0 : index
    %c0_140 = arith.constant 0 : index
    %148 = vector.load %arg12[%c0_139, %c0_140] : memref<1x32xf32, #tpu.memory_space<vmem>>, vector<1x32xf32>
    %149 = vector.broadcast %148 : vector<1x32xf32> to vector<16x32xf32>
    %150 = arith.mulf %147, %149 : vector<16x32xf32>
    %cst_141 = arith.constant dense<0.000000e+00> : vector<16xf32>
    %151 = vector.multi_reduction <add>, %150, %cst_141 [1] : vector<16x32xf32> to vector<16xf32>
    %152 = vector.shape_cast %151 : vector<16xf32> to vector<16x1xf32>
    %cst_142 = arith.constant dense<0xFF800000> : vector<1xf32>
    %153 = vector.multi_reduction <maximumf>, %152, %cst_142 [0] : vector<16x1xf32> to vector<1xf32>
    %154 = vector.shape_cast %153 : vector<1xf32> to vector<1x1xf32>
    %155 = vector.broadcast %154 : vector<1x1xf32> to vector<16x1xf32>
    %156 = arith.subf %152, %155 : vector<16x1xf32>
    %157 = math.exp %156 : vector<16x1xf32>
    %158 = vector.broadcast %157 : vector<16x1xf32> to vector<16x32xf32>
    %159 = arith.mulf %158, %135 : vector<16x32xf32>
    %cst_143 = arith.constant dense<0.000000e+00> : vector<2x32xf32>
    %160 = tpu.matmul %137, %159, %cst_143 {dimension_numbers = #tpu.dot_dimension_numbers<[1], [0], [0], [1], [0, 0, 1, 1], [], []>} : vector<2x16xf32>, vector<16x32xf32>, vector<2x32xf32> -> vector<2x32xf32>
    %cst_144 = arith.constant dense<0.000000e+00> : vector<2x1xf32>
    %161 = tpu.matmul %137, %157, %cst_144 {dimension_numbers = #tpu.dot_dimension_numbers<[1], [0], [0], [1], [0, 0, 1, 1], [], []>} : vector<2x16xf32>, vector<16x1xf32>, vector<2x1xf32> -> vector<2x1xf32>
    %162 = vector.broadcast %161 : vector<2x1xf32> to vector<2x32xf32>
    %163 = arith.divf %160, %162 : vector<2x32xf32>
    %c0_145 = arith.constant 0 : index
    %c0_146 = arith.constant 0 : index
    %164 = vector.load %arg13[%c0_145, %c0_146] : memref<32x32xf32, #tpu.memory_space<vmem>>, vector<32x32xf32>
    %cst_147 = arith.constant dense<0.000000e+00> : vector<2x32xf32>
    %165 = tpu.matmul %163, %164, %cst_147 {dimension_numbers = #tpu.dot_dimension_numbers<[1], [0], [0], [1], [0, 0, 1, 1], [], []>} : vector<2x32xf32>, vector<32x32xf32>, vector<2x32xf32> -> vector<2x32xf32>
    %c0_148 = arith.constant 0 : index
    %c0_149 = arith.constant 0 : index
    %166 = vector.load %arg14[%c0_148, %c0_149] : memref<32x32xf32, #tpu.memory_space<vmem>>, vector<32x32xf32>
    %cst_150 = arith.constant dense<0.000000e+00> : vector<2x32xf32>
    %167 = tpu.matmul %131, %166, %cst_150 {dimension_numbers = #tpu.dot_dimension_numbers<[1], [0], [0], [1], [0, 0, 1, 1], [], []>} : vector<2x32xf32>, vector<32x32xf32>, vector<2x32xf32> -> vector<2x32xf32>
    %168 = arith.addf %165, %167 : vector<2x32xf32>
    %169 = math.tanh %168 : vector<2x32xf32>
    %c0_151 = arith.constant 0 : index
    %c0_152 = arith.constant 0 : index
    %170 = vector.load %arg15[%c0_151, %c0_152] : memref<32x64xf32, #tpu.memory_space<vmem>>, vector<32x64xf32>
    %cst_153 = arith.constant dense<0.000000e+00> : vector<2x64xf32>
    %171 = tpu.matmul %169, %170, %cst_153 {dimension_numbers = #tpu.dot_dimension_numbers<[1], [0], [0], [1], [0, 0, 1, 1], [], []>} : vector<2x32xf32>, vector<32x64xf32>, vector<2x64xf32> -> vector<2x64xf32>
    %c0_154 = arith.constant 0 : index
    %c0_155 = arith.constant 0 : index
    %172 = vector.load %arg16[%c0_154, %c0_155] : memref<2x64xf32, #tpu.memory_space<vmem>>, vector<2x64xf32>
    tpu.vector_store %arg16[%c0_154, %c0_155], %171 {strides = array<i32>} : memref<2x64xf32, #tpu.memory_space<vmem>>, vector<2x64xf32>,
    return
  }
}

</mosaic_0001>

<bundles_post_ra>
// kernel: tpu_custom_call.1
= control target key start
LH: loop header
LB: loop body
LE: loop exit
PB: predicated region body
PF: predicated region fallthrough
CT: control target
= control target key end

     0   :  { %s3208_s0 = inlined_call_operand.vmem [shape: f32[2,32], index: 0, kind: input, shape index: {}]   ;;  %s3209_s1 = inlined_call_operand.hbm [shape: f32[2,2,32], index: 1, kind: input, shape index: {}, may-alias: {1,17}]   ;;  %s3210_s2 = inlined_call_operand.vmem [shape: f32[16,32], index: 2, kind: input, shape index: {}]   ;;  %s3211_s3 = inlined_call_operand.vmem [shape: f32[16,2], index: 3, kind: input, shape index: {}]   ;;  %s3212_s4 = inlined_call_operand.vmem [shape: f32[2,16], index: 4, kind: input, shape index: {}]   ;;  %s3213_s5 = inlined_call_operand.hbm [shape: f32[2,3,32,32], index: 5, kind: input, shape index: {}]   ;;  %s3214_s6 = inlined_call_operand.hbm [shape: f32[2,3,32,32], index: 6, kind: input, shape index: {}]   ;;  %s3215_s7 = inlined_call_operand.vmem [shape: f32[2,3,1,32], index: 7, kind: input, shape index: {}]   ;;  %s3216_s8 = inlined_call_operand.hbm [shape: f32[2,3,1,32], index: 8, kind: input, shape index: {}]   ;;  %s3217_s9 = inlined_call_operand.vmem [shape: f32[32,32], index: 9, kind: input, shape index: {}]   ;;  %s3218_s10 = inlined_call_operand.hbm [shape: f32[32,32], index: 10, kind: input, shape index: {}]   ;;  %s3219_s11 = inlined_call_operand.hbm [shape: f32[1,32], index: 11, kind: input, shape index: {}]   ;;  %s3220_s12 = inlined_call_operand.hbm [shape: f32[1,32], index: 12, kind: input, shape index: {}]   ;;  %s3221_s13 = inlined_call_operand.hbm [shape: f32[32,32], index: 13, kind: input, shape index: {}]   ;;  %s3222_s14 = inlined_call_operand.hbm [shape: f32[32,32], index: 14, kind: input, shape index: {}]   ;;  %s3223_s15 = inlined_call_operand.hbm [shape: f32[32,64], index: 15, kind: input, shape index: {}]   ;;  %s3224_s16 = inlined_call_operand.hbm [shape: f32[2,64], index: 16, kind: output, shape index: {0}]   ;;  %s3225_s17 = inlined_call_operand.hbm [shape: f32[2,2,32], index: 17, kind: output, shape index: {1}, may-alias: {1,17}]  }
   0x1   :  { %3231 = sst [smem:[#allocation30_spill]] %s3208_s0 }
   0x2   :  { %3232 = sst [smem:[#allocation31_spill]] %s3209_s1 }
   0x3   :  { %23 = vsyncpa [#allocation3], 0 }
   0x4   :  { %24 = vsyncpa [#allocation6], 0 }
   0x5   :  { %25 = vsyncpa [#allocation9], 0 }
   0x6   :  { %26 = vsyncpa [#allocation12], 0 }
   0x7   :  { %27 = vsyncpa [#allocation15], 0 }
   0x8   :  { %28 = vsyncpa [#allocation18], 0 }
   0x9   :  { %29 = vsyncpa [#allocation4], 0 }
   0xa   :  { %30 = vsyncpa [#allocation21], 0  ;;  %s2767_s24 = smov [#allocation5]   ;;  %s2487_s28 = scalar_lea.hbm %s3213_s5, 3072 }
   0xb   :  { %s56_s25 = sshll.u32 %s2767_s24, 4  ;;  %p2488_p0 = scmp.ne.s32.totalorder %s3213_s5, %s2487_s28  ;;  %s57_s25 = int_to_ptr.vmem [resolvable:$true] %s56_s25 }
   0xc   :  { %p2491_p1 = scmp.lt.u32.totalorder %s2487_s28, %s3213_s5 }
   0xe   :  { %p2493_p2 = pnand %p2491_p1, %p2488_p0 }
  0x10   :  { %2496 = shalt.err (!%p2493_p2)
}
  0x11   :  { %s2497_s19 = scalar_lea.vmem %s57_s25, 3072  ;;  %p2502_p4 = scmp.lt.s32.totalorder %s57_s25, %s57_s25 }
  0x12   :  { %p2498_p3 = scmp.ne.s32.totalorder %s57_s25, %s2497_s19  ;;  %p2503_p5 = scmp.lt.s32.totalorder %s2497_s19, %s2497_s19 }
  0x14   :  { %p2504_p6 = por %p2503_p5, %p2502_p4 }
  0x16   :  { %p2505_p7 = pnand %p2504_p6, %p2498_p3 }
  0x18   :  { %2508 = shalt.err (!%p2505_p7)
}
  0x19   :  { %s3227_s1 = smov 128   ;;  %s3229_s20 = smov 8  }
  0x1a   :  { %62 = dma.hbm_to_vmem [thread:$0]  %s3213_s5, 3072, %s57_s25, [#allocation6], %s3227_s1, %s3227_s1, %s3229_s20  }
  0x1b   :  { %s2770_s23 = smov [#allocation8]   ;;  %s2509_s28 = scalar_lea.hbm %s3216_s8, 96 }
  0x1c   :  { %s82_s24 = sshll.u32 %s2770_s23, 4  ;;  %p2510_p8 = scmp.ne.s32.totalorder %s3216_s8, %s2509_s28  ;;  %s83_s24 = int_to_ptr.vmem [resolvable:$true] %s82_s24 }
  0x1d   :  { %p2513_p9 = scmp.lt.u32.totalorder %s2509_s28, %s3216_s8 }
  0x1f   :  { %p2515_p10 = pnand %p2513_p9, %p2510_p8 }
  0x21   :  { %2518 = shalt.err (!%p2515_p10)
}
  0x22   :  { %s2519_s19 = scalar_lea.vmem %s83_s24, 96  ;;  %p2524_p12 = scmp.lt.s32.totalorder %s83_s24, %s83_s24 }
  0x23   :  { %p2520_p11 = scmp.ne.s32.totalorder %s83_s24, %s2519_s19  ;;  %p2525_p13 = scmp.lt.s32.totalorder %s2519_s19, %s2519_s19 }
  0x25   :  { %p2526_p0 = por %p2525_p13, %p2524_p12 }
  0x27   :  { %p2527_p1 = pnand %p2526_p0, %p2520_p11 }
  0x29   :  { %2530 = shalt.err (!%p2527_p1)
}
  0x2a   :  { %s2771_s5 = smov 16   ;;  %s2772_s25 = smov 1  }
  0x2b   :  { %88 = dma.hbm_to_vmem [thread:$0]  %s3216_s8, 96, %s83_s24, [#allocation9], %s2771_s5, %s2771_s5, %s2772_s25  }
  0x2c   :  { %s2773_s23 = smov [#allocation11]   ;;  %s2774_s27 = smov [#allocation14]  }
  0x2d   :  { %s109_s26 = sshll.u32 %s2773_s23, 4  ;;  %s128_s29 = sshll.u32 %s2774_s27, 4  ;;  %s110_s26 = int_to_ptr.vmem [resolvable:$true] %s109_s26  ;;  %s2906_s29 = int_to_ptr.vmem [resolvable:$true] %s128_s29 }
  0x2e   :  { %s2531_s30 = scalar_lea.hbm %s3219_s11, 16 }
  0x2f   :  { %p2532_p2 = scmp.ne.s32.totalorder %s3219_s11, %s2531_s30  ;;  %p2535_p3 = scmp.lt.u32.totalorder %s2531_s30, %s3219_s11 }
  0x31   :  { %p2537_p4 = pnand %p2535_p3, %p2532_p2 }
  0x33   :  { %2540 = shalt.err (!%p2537_p4)
}
  0x34   :  { %s2541_s8 = scalar_lea.vmem %s110_s26, 16  ;;  %s2545_s24 = scalar_lea.vmem %s110_s26, 32 }
  0x35   :  { %p2542_p5 = scmp.ne.s32.totalorder %s110_s26, %s2541_s8  ;;  %p2546_p6 = scmp.lt.s32.totalorder %s110_s26, %s110_s26 }
  0x36   :  { %p2547_p7 = scmp.lt.s32.totalorder %s2545_s24, %s2541_s8 }
  0x38   :  { %p2548_p8 = por %p2547_p7, %p2546_p6 }
  0x3a   :  { %p2549_p9 = pnand %p2548_p8, %p2542_p5 }
  0x3c   :  { %2552 = shalt.err (!%p2549_p9)
}
  0x3d   :  { %112 = dma.hbm_to_vmem [thread:$0]  %s3219_s11, 16, %s110_s26, [#allocation12]  }
  0x3e   :  { %s2553_s23 = scalar_lea.hbm %s3221_s13, 512 }
  0x3f   :  { %p2554_p10 = scmp.ne.s32.totalorder %s3221_s13, %s2553_s23  ;;  %p2557_p11 = scmp.lt.u32.totalorder %s2553_s23, %s3221_s13 }
  0x41   :  { %p2559_p12 = pnand %p2557_p11, %p2554_p10 }
  0x43   :  { %2562 = shalt.err (!%p2559_p12)
}
  0x44   :  { %s2563_s0 = scalar_lea.vmem %s2906_s29, 512  ;;  %p2568_p0 = scmp.lt.s32.totalorder %s2906_s29, %s2906_s29 }
  0x45   :  { %p2564_p13 = scmp.ne.s32.totalorder %s2906_s29, %s2563_s0  ;;  %p2569_p1 = scmp.lt.s32.totalorder %s2563_s0, %s2563_s0 }
  0x47   :  { %p2570_p2 = por %p2569_p1, %p2568_p0 }
  0x49   :  { %p2571_p3 = pnand %p2570_p2, %p2564_p13 }
  0x4b   :  { %2574 = shalt.err (!%p2571_p3)
}
  0x4c   :  { %s3233_s11 = smov 8   ;;  %s3234_s26 = smov 128  }
  0x4d   :  { %134 = dma.hbm_to_vmem [thread:$0]  %s3221_s13, 512, %s2906_s29, [#allocation15], %s3234_s26, %s3234_s26, %s3233_s11  }
  0x4e   :  { %s2775_s19 = smov [#allocation2]   ;;  %s3235_s25 = sld [smem:[#allocation31_spill]] }
  0x4f   :  { %s38_s8 = sshll.u32 %s2775_s19, 4  ;;  %s39_s8 = int_to_ptr.vmem [resolvable:$true] %s38_s8 }
  0x54   :  { %s2575_s21 = scalar_lea.hbm %s3235_s25, 64 }
  0x55   :  { %p2576_p4 = scmp.ne.s32.totalorder %s3235_s25, %s2575_s21  ;;  %p2579_p5 = scmp.lt.u32.totalorder %s2575_s21, %s3235_s25 }
  0x57   :  { %p2581_p6 = pnand %p2579_p5, %p2576_p4 }
  0x59   :  { %2584 = shalt.err (!%p2581_p6)
}
  0x5a   :  { %s2585_s27 = scalar_lea.vmem %s39_s8, 64  ;;  %p2590_p8 = scmp.lt.s32.totalorder %s39_s8, %s39_s8 }
  0x5b   :  { %p2586_p7 = scmp.ne.s32.totalorder %s39_s8, %s2585_s27  ;;  %p2591_p9 = scmp.lt.s32.totalorder %s2585_s27, %s2585_s27 }
  0x5d   :  { %p2592_p10 = por %p2591_p9, %p2590_p8 }
  0x5f   :  { %p2593_p11 = pnand %p2592_p10, %p2586_p7 }
  0x61   :  { %2596 = shalt.err (!%p2593_p11)
}
  0x62   :  { %s2776_s13 = smov 32   ;;  %s2777_s29 = smov 2  }
  0x63   :  { %44 = dma.hbm_to_vmem [thread:$0]  %s3235_s25, 64, %s39_s8, [#allocation3], %s2776_s13, %s2776_s13, %s2777_s29  }
  0x64   :  { %s2778_s30 = smov [#allocation7]   ;;  %s2779_s19 = smov [#allocation10]  }
  0x65   :  { %s68_s18 = sshll.u32 %s2778_s30, 4  ;;  %s96_s24 = sshll.u32 %s2779_s19, 4  ;;  %s69_s18 = int_to_ptr.vmem [resolvable:$true] %s68_s18  ;;  %s97_s24 = int_to_ptr.vmem [resolvable:$true] %s96_s24 }
  0x66   :  { %s2597_s22 = scalar_lea.hbm %s3214_s6, 3072 }
  0x67   :  { %p2598_p12 = scmp.ne.s32.totalorder %s3214_s6, %s2597_s22  ;;  %p2601_p13 = scmp.lt.u32.totalorder %s2597_s22, %s3214_s6 }
  0x69   :  { %p2603_p0 = pnand %p2601_p13, %p2598_p12 }
  0x6b   :  { %2606 = shalt.err (!%p2603_p0)
}
  0x6c   :  { %s2607_s8 = scalar_lea.vmem %s69_s18, 3072  ;;  %p2612_p2 = scmp.lt.s32.totalorder %s69_s18, %s69_s18 }
  0x6d   :  { %p2608_p1 = scmp.ne.s32.totalorder %s69_s18, %s2607_s8  ;;  %p2613_p3 = scmp.lt.s32.totalorder %s2607_s8, %s2607_s8 }
  0x6f   :  { %p2614_p4 = por %p2613_p3, %p2612_p2 }
  0x71   :  { %p2615_p5 = pnand %p2614_p4, %p2608_p1 }
  0x73   :  { %2618 = shalt.err (!%p2615_p5)
}
  0x74   :  { %74 = dma.hbm_to_vmem [thread:$0]  %s3214_s6, 3072, %s69_s18, [#allocation6], %s3234_s26, %s3234_s26, %s3233_s11  }
  0x75   :  { %s2619_s19 = scalar_lea.hbm %s3218_s10, 512 }
  0x76   :  { %p2620_p6 = scmp.ne.s32.totalorder %s3218_s10, %s2619_s19  ;;  %p2623_p7 = scmp.lt.u32.totalorder %s2619_s19, %s3218_s10 }
  0x78   :  { %p2625_p8 = pnand %p2623_p7, %p2620_p6 }
  0x7a   :  { %2628 = shalt.err (!%p2625_p8)
}
  0x7b   :  { %s2629_s1 = scalar_lea.vmem %s97_s24, 512  ;;  %p2634_p10 = scmp.lt.s32.totalorder %s97_s24, %s97_s24 }
  0x7c   :  { %p2630_p9 = scmp.ne.s32.totalorder %s97_s24, %s2629_s1  ;;  %p2635_p11 = scmp.lt.s32.totalorder %s2629_s1, %s2629_s1 }
  0x7e   :  { %p2636_p12 = por %p2635_p11, %p2634_p10 }
  0x80   :  { %p2637_p13 = pnand %p2636_p12, %p2630_p9 }
  0x82   :  { %2640 = shalt.err (!%p2637_p13)
}
  0x83   :  { %102 = dma.hbm_to_vmem [thread:$0]  %s3218_s10, 512, %s97_s24, [#allocation9], %s3234_s26, %s3234_s26, %s3233_s11  }
  0x84   :  { %s2780_s20 = smov [#allocation13]   ;;  %s2781_s8 = smov [#allocation16]  }
  0x85   :  { %s119_s27 = sshll.u32 %s2780_s20, 4  ;;  %s140_s25 = sshll.u32 %s2781_s8, 4  ;;  %s120_s27 = int_to_ptr.vmem [resolvable:$true] %s119_s27  ;;  %s141_s25 = int_to_ptr.vmem [resolvable:$true] %s140_s25 }
  0x86   :  { %s2641_s30 = scalar_lea.hbm %s3220_s12, 16 }
  0x87   :  { %p2642_p0 = scmp.ne.s32.totalorder %s3220_s12, %s2641_s30  ;;  %p2645_p1 = scmp.lt.u32.totalorder %s2641_s30, %s3220_s12 }
  0x89   :  { %p2647_p2 = pnand %p2645_p1, %p2642_p0 }
  0x8b   :  { %2650 = shalt.err (!%p2647_p2)
}
  0x8c   :  { %s2651_s10 = scalar_lea.vmem %s120_s27, 16  ;;  %s2655_s24 = scalar_lea.vmem %s120_s27, 32 }
  0x8d   :  { %p2652_p3 = scmp.ne.s32.totalorder %s120_s27, %s2651_s10  ;;  %p2656_p4 = scmp.lt.s32.totalorder %s120_s27, %s120_s27 }
  0x8e   :  { %p2657_p5 = scmp.lt.s32.totalorder %s2655_s24, %s2651_s10 }
  0x90   :  { %p2658_p6 = por %p2657_p5, %p2656_p4 }
  0x92   :  { %p2659_p7 = pnand %p2658_p6, %p2652_p3 }
  0x94   :  { %2662 = shalt.err (!%p2659_p7)
}
  0x95   :  { %122 = dma.hbm_to_vmem [thread:$0]  %s3220_s12, 16, %s120_s27, [#allocation12]  }
  0x96   :  { %s2663_s20 = scalar_lea.hbm %s3222_s14, 512 }
  0x97   :  { %p2664_p8 = scmp.ne.s32.totalorder %s3222_s14, %s2663_s20  ;;  %p2667_p9 = scmp.lt.u32.totalorder %s2663_s20, %s3222_s14 }
  0x99   :  { %p2669_p10 = pnand %p2667_p9, %p2664_p8 }
  0x9b   :  { %2672 = shalt.err (!%p2669_p10)
}
  0x9c   :  { %s2673_s19 = scalar_lea.vmem %s141_s25, 512  ;;  %p2678_p12 = scmp.lt.s32.totalorder %s141_s25, %s141_s25 }
  0x9d   :  { %p2674_p11 = scmp.ne.s32.totalorder %s141_s25, %s2673_s19  ;;  %p2679_p13 = scmp.lt.s32.totalorder %s2673_s19, %s2673_s19 }
  0x9f   :  { %p2680_p0 = por %p2679_p13, %p2678_p12 }
  0xa1   :  { %p2681_p1 = pnand %p2680_p0, %p2674_p11 }
  0xa3   :  { %2684 = shalt.err (!%p2681_p1)
}
  0xa4   :  { %146 = dma.hbm_to_vmem [thread:$0]  %s3222_s14, 512, %s141_s25, [#allocation15], %s3234_s26, %s3234_s26, %s3233_s11  }
  0xa5   :  { %s2782_s5 = smov [#allocation17]   ;;  %s2685_s24 = scalar_lea.hbm %s3223_s15, 512 }
  0xa6   :  { %s152_s21 = sshll.u32 %s2782_s5, 4  ;;  %p2686_p2 = scmp.ne.s32.totalorder %s3223_s15, %s2685_s24  ;;  %s153_s21 = int_to_ptr.vmem [resolvable:$true] %s152_s21 }
  0xa7   :  { %p2689_p3 = scmp.lt.u32.totalorder %s2685_s24, %s3223_s15 }
  0xa9   :  { %p2691_p4 = pnand %p2689_p3, %p2686_p2 }
  0xab   :  { %2694 = shalt.err (!%p2691_p4)
}
  0xac   :  { %s2695_s20 = scalar_lea.vmem %s153_s21, 512  ;;  %p2700_p6 = scmp.lt.s32.totalorder %s153_s21, %s153_s21 }
  0xad   :  { %p2696_p5 = scmp.ne.s32.totalorder %s153_s21, %s2695_s20  ;;  %p2701_p7 = scmp.lt.s32.totalorder %s2695_s20, %s2695_s20 }
  0xaf   :  { %p2702_p8 = por %p2701_p7, %p2700_p6 }
  0xb1   :  { %p2703_p9 = pnand %p2702_p8, %p2696_p5 }
  0xb3   :  { %2706 = shalt.err (!%p2703_p9)
}
  0xb4   :  { %158 = dma.hbm_to_vmem [thread:$0]  %s3223_s15, 512, %s153_s21, [#allocation18], %s3234_s26, %s3234_s26, %s3233_s11  }
  0xb5   :  { %2751 = dma.done.wait [#allocation3], 64  }
  0xb6   :  { %2752 = vsyncadd [#allocation3], 4294967232 }
  0xb7   :  { %2753 = dma.done.wait [#allocation6], 6144  }
  0xb8   :  { %2754 = vsyncadd [#allocation6], 4294961152 }
  0xb9   :  { %2755 = dma.done.wait [#allocation9], 608  }
  0xba   :  { %2756 = vsyncadd [#allocation9], 4294966688 }
  0xbb   :  { %2757 = dma.done.wait [#allocation12], 32  }
  0xbc   :  { %2758 = vsyncadd [#allocation12], 4294967264 }
  0xbd   :  { %2759 = dma.done.wait [#allocation15], 1024  }
  0xbe   :  { %2760 = vsyncadd [#allocation15], 4294966272 }
  0xbf   :  { %2761 = dma.done.wait [#allocation18], 512  }
  0xc0   :  { %2762 = vsyncadd [#allocation18], 4294966784  ;;  %v2783_v0 = vmov 0.0|0.0   ;;  %vm2784_vm0 = vmmov 0   ;;  %v2785_v1 = vmov 0.0   ;;  %v191_v2 = vld [vmem:[#allocation5] sm:$0xff] }
  0xc1   :  { %2301 = vmatprep.subr.bf16.mxu0 %v2783_v0  ;;  %2103 = vmatprep.mubr.msk.f32.mxu0 %vm2784_vm0, %v2785_v1  ;;  %v192_v3 = vld [vmem:[#allocation5 + $0x8] sm:$0xff]  ;;  %v193_v4 = vld [vmem:[#allocation5 + $0x10] sm:$0xff]  ;;  %v194_v6 = vld [vmem:[#allocation5 + $0x18] sm:$0xff]  ;;  %s3236_s26 = sld [smem:[#allocation30_spill]]  ;;  %vm202_vm1 = vcmask 261120   ;;  %vm713_vm2 = vcmask 254976  }
  0xc2   :  { %2307 = vmatprep.subr.bf16.mxu1 %v2783_v0  ;;  %2114 = vmatprep.mubr.msk.f32.mxu1 %vm2784_vm0, %v2785_v1  ;;  %v2302_v5 = vpack.c.bf16 %v192_v3, %v191_v2  ;;  %v277_v7 = vld [vmem:[#allocation5 + $0x20] sm:$0xff]  ;;  %v278_v8 = vld [vmem:[#allocation5 + $0x28] sm:$0xff]  ;;  %v2305_v9 = vpack.c.bf16 %v194_v6, %v193_v4  ;;  %v279_v11 = vld [vmem:[#allocation5 + $0x30] sm:$0xff]  ;;  %vm1337_vm3 = vcmask 15360   ;;  %vm1344_vm4 = vcmask 1041408  }
  0xc3   :  { %v2308_v10 = vpack.c.bf16 %v278_v8, %v277_v7  ;;  %v360_v12 = vld [vmem:[#allocation5 + $0x40] sm:$0xff]  ;;  %v361_v13 = vld [vmem:[#allocation5 + $0x48] sm:$0xff]  ;;  %v280_v14 = vld [vmem:[#allocation5 + $0x38] sm:$0xff]  ;;  %vm1536_vm5 = vcmask 130048  }
  0xc4   :  { %2303 = vmatpush3.bf16.msra.mxu0 %v2302_v5  ;;  %v2311_v15 = vpack.c.bf16 %v280_v14, %v279_v11  ;;  %v527_v16 = vld [vmem:[#allocation7 + $0x20] sm:$0xff]  ;;  %v528_v17 = vld [vmem:[#allocation7 + $0x28] sm:$0xff]  ;;  %v2314_v19 = vpack.c.bf16 %v361_v13, %v360_v12  ;;  %v362_v20 = vld [vmem:[#allocation5 + $0x50] sm:$0xff] }
  0xc5   :  { %2304 = vmatprep.subr.bf16.mxu0 %v2783_v0  ;;  %2309 = vmatpush3.bf16.msra.mxu1 %v2308_v10  ;;  %v363_v21 = vld [vmem:[#allocation5 + $0x58] sm:$0xff]  ;;  %v2326_v22 = vpack.c.bf16 %v528_v17, %v527_v16  ;;  %v529_v23 = vld [vmem:[#allocation7 + $0x30] sm:$0xff]  ;;  %v442_v26 = vld [vmem:[#allocation7] sm:$0xff] }
  0xc6   :  { %2310 = vmatprep.subr.bf16.mxu1 %v2783_v0  ;;  %v530_v24 = vld [vmem:[#allocation7 + $0x38] sm:$0xff]  ;;  %v2317_v25 = vpack.c.bf16 %v363_v21, %v362_v20  ;;  %v443_v27 = vld [vmem:[#allocation7 + $0x8] sm:$0xff]  ;;  %v610_v29 = vld [vmem:[#allocation7 + $0x40] sm:$0xff] }
  0xc7   :  { %v189_v18 = vld [vmem:[%s3236_s26] sm:$0x3]  ;;  %v2329_v28 = vpack.c.bf16 %v530_v24, %v529_v23  ;;  %v611_v30 = vld [vmem:[#allocation7 + $0x48] sm:$0xff]  ;;  %v2320_v31 = vpack.c.bf16 %v443_v27, %v442_v26  ;;  %v444_v32 = vld [vmem:[#allocation7 + $0x10] sm:$0xff] }
  0xc8   :  { %2306 = vmatpush3.bf16.msra.mxu0 %v2305_v9  ;;  %v445_v33 = vld [vmem:[#allocation7 + $0x18] sm:$0xff]  ;;  %v2332_v34 = vpack.c.bf16 %v611_v30, %v610_v29  ;;  %v612_v35 = vld [vmem:[#allocation7 + $0x50] sm:$0xff]  ;;  %v718_v40 = vld [vmem:[#allocation5 + $0x60] sm:$0xff] }
  0xc9   :  { %2313 = vmatprep.subr.bf16.mxu0 %v2783_v0  ;;  %2312 = vmatpush3.bf16.msra.mxu1 %v2311_v15  ;;  %v613_v36 = vld [vmem:[#allocation7 + $0x58] sm:$0xff]  ;;  %v2323_v37 = vpack.c.bf16 %v445_v33, %v444_v32  ;;  %v719_v41 = vld [vmem:[#allocation5 + $0x68] sm:$0xff]  ;;  %v804_v42 = vld [vmem:[#allocation5 + $0x80] sm:$0xff] }
  0xca   :  { %2325 = vmatprep.subr.bf16.mxu1 %v2783_v0  ;;  %v3053_v38 = vld [vmem:[#allocation2] sm:$0x3]  ;;  %v2335_v39 = vpack.c.bf16 %v613_v36, %v612_v35  ;;  %v2338_v43 = vpack.c.bf16 %v719_v41, %v718_v40  ;;  %v805_v44 = vld [vmem:[#allocation5 + $0x88] sm:$0xff]  ;;  %v720_v45 = vld [vmem:[#allocation5 + $0x70] sm:$0xff] }
  0xcb   :  { %2104 = vmatmul.mubr.msk.f32.vlgmr.msra.gmra.mrb[0].mxu0 %vm202_vm1, %v189_v18  ;;  %v721_v46 = vld [vmem:[#allocation5 + $0x78] sm:$0xff]  ;;  %v2344_v47 = vpack.c.bf16 %v805_v44, %v804_v42  ;;  %v806_v48 = vld [vmem:[#allocation5 + $0x90] sm:$0xff]  ;;  %v1962_v55 = vld [vmem:[#allocation8] ss:$0 sm:$0xff] }
  0xcc   :  { %2315 = vmatpush3.bf16.msra.mxu0 %v2314_v19  ;;  %2125 = vmatprep.mubr.msk.f32.mxu0 %vm2784_vm0, %v2785_v1  ;;  %v807_v49 = vld [vmem:[#allocation5 + $0x98] sm:$0xff]  ;;  %v2341_v50 = vpack.c.bf16 %v721_v46, %v720_v45  ;;  %v1964_v60 = vld [vmem:[#allocation8 + $0x1] ss:$0 sm:$0xff]  ;;  %v1966_v11 = vld [vmem:[#allocation8 + $0x2] ss:$0 sm:$0xff] }
  0xcd   :  { %2316 = vmatprep.subr.bf16.mxu0 %v2783_v0  ;;  %2115 = vmatmul.mubr.msk.f32.vlgmr.msra.gmra.mrb[0].mxu1 %vm202_vm1, %v189_v18  ;;  %v2347_v51 = vpack.c.bf16 %v807_v49, %v806_v48  ;;  %v1954_v54 = vld [vmem:[%s3215_s7] ss:$0 sm:$0xff]  ;;  %v1957_v59 = vld [vmem:[%s3215_s7 + $0x1] ss:$0 sm:$0xff]  ;;  %v1960_v14 = vld [vmem:[%s3215_s7 + $0x2] ss:$0 sm:$0xff] }
  0xce   :  { %2327 = vmatpush3.bf16.msra.mxu1 %v2326_v22  ;;  %2147 = vmatprep.mubr.msk.f32.mxu1 %vm2784_vm0, %v2785_v1  ;;  %v2411_v58 = vadd.f32 %v1962_v55, %v1954_v54  ;;  %v2413_v62 = vadd.f32 %v1964_v60, %v1957_v59  ;;  %v887_v20 = vld [vmem:[#allocation5 + $0xa0] sm:$0xff]  ;;  %v888_v22 = vld [vmem:[#allocation5 + $0xa8] sm:$0xff]  ;;  %v889_v30 = vld [vmem:[#allocation5 + $0xb0] sm:$0xff] }
  0xcf   :  { %2328 = vmatprep.subr.bf16.mxu1 %v2783_v0  ;;  %v1056_v23 = vld [vmem:[#allocation7 + $0x80] sm:$0xff]  ;;  %v1057_v24 = vld [vmem:[#allocation7 + $0x88] sm:$0xff]  ;;  %v890_v32 = vld [vmem:[#allocation5 + $0xb8] sm:$0xff] }
  0xd0   :  { %2318 = vmatpush3.bf16.msra.mxu0 %v2317_v25  ;;  %v2362_v29 = vpack.c.bf16 %v1057_v24, %v1056_v23  ;;  %v1058_v33 = vld [vmem:[#allocation7 + $0x90] sm:$0xff]  ;;  %v2353_v35 = vpack.c.bf16 %v890_v32, %v889_v30  ;;  %v1140_v40 = vld [vmem:[#allocation7 + $0xa8] sm:$0xff]  ;;  %v3094_v42 = vld [vmem:[#allocation2 + $0x2] sm:$0x3] }
  0xd1   :  { %2319 = vmatprep.subr.bf16.mxu0 %v2783_v0  ;;  %v973_v44 = vld [vmem:[#allocation7 + $0x78] sm:$0xff]  ;;  %v1141_v46 = vld [vmem:[#allocation7 + $0xb0] sm:$0xff]  ;;  %v1987_v30 = vld [vmem:[#allocation11] ss:$0 sm:$0xff] }
  0xd2   :  { %2330 = vmatpush3.bf16.msra.mxu1 %v2329_v28  ;;  %v2350_v28 = vpack.c.bf16 %v888_v22, %v887_v20  ;;  %v1256_v54 = vld [vmem:[%s3217_s9 + $0x18] sm:$0xff]  ;;  %v1971_v60 = vld [vmem:[%s3215_s7 + $0x3] ss:$0 sm:$0xff] }
  0xd3   :  { %2126 = vmatmul.mubr.msk.f32.vlgmr.msra.gmra.mrb[2].mxu0 %vm202_vm1, %v189_v18  ;;  %2331 = vmatprep.subr.bf16.mxu1 %v2783_v0  ;;  %v1250_v32 = vld [vmem:[#allocation10 + $0x8] sm:$0xff] }
  0xd4   :  { %2321 = vmatpush3.bf16.msra.mxu0 %v2320_v31  ;;  %2136 = vmatprep.mubr.msk.f32.mxu0 %vm2784_vm0, %v2785_v1 }
  0xd5   :  { %2322 = vmatprep.subr.bf16.mxu0 %v2783_v0  ;;  %2148 = vmatmul.mubr.msk.f32.vlgmr.msra.gmra.mrb[0].mxu1 %vm202_vm1, %v3053_v38 }
  0xd6   :  { %2333 = vmatpush3.bf16.msra.mxu1 %v2332_v34  ;;  %2158 = vmatprep.mubr.msk.f32.mxu1 %vm2784_vm0, %v2785_v1  ;;  %v1059_v34 = vld [vmem:[#allocation7 + $0x98] sm:$0xff] }
  0xd7   :  { %2334 = vmatprep.subr.bf16.mxu1 %v2783_v0  ;;  %v2365_v36 = vpack.c.bf16 %v1059_v34, %v1058_v33  ;;  %v1251_v34 = vld [vmem:[#allocation10 + $0x10] sm:$0xff] }
  0xd8   :  { %2324 = vmatpush3.bf16.msra.mxu0 %v2323_v37  ;;  %v970_v37 = vld [vmem:[#allocation7 + $0x60] sm:$0xff] }
  0xd9   :  { %2337 = vmatprep.subr.bf16.mxu0 %v2783_v0 }
  0xda   :  { %2336 = vmatpush3.bf16.msra.mxu1 %v2335_v39  ;;  %v1139_v39 = vld [vmem:[#allocation7 + $0xa0] sm:$0xff] }
  0xdb   :  { %2137 = vmatmul.mubr.msk.f32.vlgmr.msra.gmra.mrb[0].mxu0 %vm202_vm1, %v3053_v38  ;;  %2343 = vmatprep.subr.bf16.mxu1 %v2783_v0  ;;  %v2368_v45 = vpack.c.bf16 %v1140_v40, %v1139_v39  ;;  %v1247_v39 = vld [vmem:[%s3211_s3 + $0x8] sm:$0xff] }
  0xdc   :  { %2169 = vmatprep.mubr.msk.f32.mxu0 %vm2784_vm0, %v2785_v1  ;;  %2339 = vmatpush3.bf16.msra.mxu0 %v2338_v43  ;;  %v972_v43 = vld [vmem:[#allocation7 + $0x70] sm:$0xff] }
  0xdd   :  { %2159 = vmatmul.mubr.msk.f32.vlgmr.msra.gmra.mrb[2].mxu1 %vm202_vm1, %v3053_v38  ;;  %2340 = vmatprep.subr.bf16.mxu0 %v2783_v0  ;;  %v2359_v48 = vpack.c.bf16 %v973_v44, %v972_v43  ;;  %v1692_v43 = vld [vmem:[#allocation16 + $0x8] sm:$0xff]  ;;  %v1245_v44 = vld [vmem:[%s3210_s2 + $0x8] sm:$0xff] }
  0xde   :  { %2180 = vmatprep.mubr.msk.f32.mxu1 %vm2784_vm0, %v2785_v1  ;;  %2345 = vmatpush3.bf16.msra.mxu1 %v2344_v47  ;;  %v1142_v47 = vld [vmem:[#allocation7 + $0xb8] sm:$0xff] }
  0xdf   :  { %2346 = vmatprep.subr.bf16.mxu1 %v2783_v0  ;;  %v2371_v49 = vpack.c.bf16 %v1142_v47, %v1141_v46  ;;  %v1693_v46 = vld [vmem:[#allocation16 + $0x10] sm:$0xff]  ;;  %v1694_v47 = vld [vmem:[#allocation16 + $0x18] sm:$0xff] }
  0xe0   :  { %2342 = vmatpush3.bf16.msra.mxu0 %v2341_v50  ;;  %v1253_v50 = vld [vmem:[%s3217_s9] sm:$0xff] }
  0xe1   :  { %2349 = vmatprep.subr.bf16.mxu0 %v2783_v0 }
  0xe2   :  { %2348 = vmatpush3.bf16.msra.mxu1 %v2347_v51  ;;  %v1254_v51 = vld [vmem:[%s3217_s9 + $0x8] sm:$0xff] }
  0xe3   :  { %2361 = vmatprep.subr.bf16.mxu1 %v2783_v0 }
 0x1a6   :  { %v438_v52 = vpop.f32.mrb[2].mxu0 }
 0x1a7   :  { %v2127_v53 = vpop.f32.mrb[3].mxu0  ;;  %v439_v16 = vadd.f32 %v1960_v14, %v438_v52  ;;  %v1255_v52 = vld [vmem:[%s3217_s9 + $0x10] sm:$0xff] }
 0x1a8   :  { %v605_v56 = vpop.f32.mrb[0].mxu1  ;;  %v2374_v53 = vpack.c.bf16 %v1254_v51, %v1253_v50  ;;  %v2377_v55 = vpack.c.bf16 %v1256_v54, %v1255_v52  ;;  %v1994_v51 = vld [vmem:[#allocation13] ss:$0 sm:$0xff] }
 0x1a9   :  { %v2149_v57 = vpop.f32.mrb[1].mxu1  ;;  %v2414_v6 = vadd.f32 %v2413_v62, %v605_v56  ;;  %v1974_v62 = vld [vmem:[%s3215_s7 + $0x4] ss:$0 sm:$0xff] }
 0x1ab   :  { %v1969_v7 = vmul.f32 -1.442695, %v2414_v6 }
 0x1ae   :  { %v522_v61 = vpop.f32.mrb[0].mxu0 }
 0x1af   :  { %v2412_v63 = vadd.f32 %v2411_v58, %v522_v61  ;;  %v2138_v2 = vpop.f32.mrb[1].mxu0  ;;  %v1979_v61 = vld [vmem:[#allocation8 + $0x3] ss:$0 sm:$0xff] }
 0x1b0   :  { %v688_v3 = vpop.f32.mrb[2].mxu1  ;;  %v2415_v2 = vadd.f32 %v1979_v61, %v1971_v60 }
 0x1b1   :  { %v1968_v4 = vmul.f32 -1.442695, %v2412_v63  ;;  %v2160_v5 = vpop.f32.mrb[3].mxu1  ;;  %v689_v13 = vadd.f32 %v1966_v11, %v688_v3  ;;  %v1981_v63 = vld [vmem:[#allocation8 + $0x4] ss:$0 sm:$0xff] }
 0x1b2   :  { %v2417_v3 = vadd.f32 %v1981_v63, %v1974_v62 }
 0x1b3   :  { %2455 = vpow2.f32 %v1968_v4 }
 0x1b4   :  { %2457 = vpow2.f32 %v1969_v7 }
 0x1bd   :  { %v2456_v8 = vpop.eup %2455 }
 0x1be   :  { %v696_v9 = vadd.f32 1.0, %v2456_v8  ;;  %v2458_v10 = vpop.eup %2457 }
 0x1bf   :  { %v703_v12 = vadd.f32 1.0, %v2458_v10 }
 0x1c0   :  { %2459 = vrcp.f32 %v696_v9 }
 0x1c1   :  { %2461 = vrcp.f32 %v703_v12 }
 0x1ca   :  { %v2460_v15 = vpop.eup %2459 }
 0x1cb   :  { %v706_v17 = vmul.f32 %v2460_v15, %v689_v13  ;;  %v2462_v19 = vpop.eup %2461  ;;  %v1983_v15 = vld [vmem:[#allocation8 + $0x5] ss:$0 sm:$0xff] }
 0x1cc   :  { %v709_v21 = vsub.f32 1.0, %v2462_v19  ;;  %v711_v27 = vmul.f32 %v2462_v19, %v3053_v38  ;;  %v971_v38 = vld [vmem:[#allocation7 + $0x68] sm:$0xff] }
 0x1cd   :  { %v707_v18 = vadd.f32 %v706_v17, %v439_v16  ;;  %v2356_v41 = vpack.c.bf16 %v971_v38, %v970_v37 }
 0x1cf   :  { %2463 = vtanh.f32 %v707_v18  ;;  %v1977_v18 = vld [vmem:[%s3215_s7 + $0x5] ss:$0 sm:$0xff] }
 0x1d9   :  { %v2464_v25 = vpop.eup %2463 }
 0x1da   :  { %v710_v26 = vmul.f32 %v2464_v25, %v709_v21 }
 0x1dc   :  { %v712_v31 = vadd.f32 %v711_v27, %v710_v26 }
 0x1de   :  { %2170 = vmatmul.mubr.msk.f32.vlgmr.msra.gmra.mrb[4].mxu0 %vm202_vm1, %v712_v31  ;;  %2181 = vmatmul.mubr.msk.f32.vlgmr.msra.gmra.mrb[4].mxu1 %vm202_vm1, %v712_v31  ;;  %714 = vst.msk [vmem:[#allocation20] sm:$0x3] %vm713_vm2, %v712_v31 }
 0x1df   :  { %2351 = vmatpush3.bf16.msra.mxu0 %v2350_v28  ;;  %2363 = vmatpush3.bf16.msra.mxu1 %v2362_v29  ;;  %v1246_v29 = vld [vmem:[%s3211_s3] sm:$0xff] }
 0x1e0   :  { %2352 = vmatprep.subr.bf16.mxu0 %v2783_v0  ;;  %2364 = vmatprep.subr.bf16.mxu1 %v2783_v0 }
 0x1e1   :  { %2191 = vmatprep.mubr.msk.f32.mxu0 %vm2784_vm0, %v2785_v1  ;;  %2213 = vmatprep.mubr.msk.f32.mxu1 %vm2784_vm0, %v2785_v1 }
 0x1e3   :  { %2354 = vmatpush3.bf16.msra.mxu0 %v2353_v35  ;;  %2366 = vmatpush3.bf16.msra.mxu1 %v2365_v36  ;;  %v1252_v35 = vld [vmem:[#allocation10 + $0x18] sm:$0xff] }
 0x1e4   :  { %2355 = vmatprep.subr.bf16.mxu0 %v2783_v0  ;;  %2367 = vmatprep.subr.bf16.mxu1 %v2783_v0  ;;  %v2383_v40 = vpack.c.bf16 %v1252_v35, %v1251_v34 }
 0x1e6   :  { %2192 = vmatmul.mubr.msk.f32.vlgmr.msra.gmra.mrb[6].mxu0 %vm202_vm1, %v712_v31  ;;  %2214 = vmatmul.mubr.msk.f32.vlgmr.msra.gmra.mrb[4].mxu1 %vm202_vm1, %v3094_v42  ;;  %v1249_v31 = vld [vmem:[#allocation10] sm:$0xff] }
 0x1e7   :  { %2357 = vmatpush3.bf16.msra.mxu0 %v2356_v41  ;;  %2202 = vmatprep.mubr.msk.f32.mxu0 %vm2784_vm0, %v2785_v1  ;;  %v2379_v38 = vpack.c.bf16 %v1250_v32, %v1249_v31  ;;  %v1244_v41 = vld [vmem:[%s3210_s2] sm:$0xff] }
 0x1e8   :  { %2358 = vmatprep.subr.bf16.mxu0 %v2783_v0  ;;  %2369 = vmatpush3.bf16.msra.mxu1 %v2368_v45  ;;  %v1841_v31 = vld [vmem:[#allocation17 + $0x10] sm:$0xff] }
 0x1e9   :  { %2370 = vmatprep.subr.bf16.mxu1 %v2783_v0  ;;  %2224 = vmatprep.mubr.msk.f32.mxu1 %vm2784_vm0, %v2785_v1 }
 0x1eb   :  { %2360 = vmatpush3.bf16.msra.mxu0 %v2359_v48  ;;  %v2397_v48 = vpack.c.bf16 %v1694_v47, %v1693_v46 }
 0x1ec   :  { %2372 = vmatpush3.bf16.msra.mxu1 %v2371_v49  ;;  %2373 = vmatprep.subr.bf16.mxu0 %v2783_v0 }
 0x1ee   :  { %2203 = vmatmul.mubr.msk.f32.vlgmr.msra.gmra.mrb[4].mxu0 %vm202_vm1, %v3094_v42 }
 0x1ef   :  { %2225 = vmatmul.mubr.msk.f32.vlgmr.msra.gmra.mrb[6].mxu1 %vm202_vm1, %v3094_v42  ;;  %2235 = vmatprep.mubr.msk.f32.mxu0 %vm2784_vm0, %v2785_v1 }
 0x1f0   :  { %2375 = vmatpush3.bf16.msra.mxu0 %v2374_v53  ;;  %2240 = vmatprep.mubr.msk.f32.mxu1 %vm1337_vm3, %v1246_v29  ;;  %v1839_v29 = vld [vmem:[#allocation17] sm:$0xff] }
 0x1f1   :  { %2376 = vmatprep.subr.bf16.mxu0 %v2783_v0 }
 0x1f4   :  { %2378 = vmatpush3.bf16.msra.mxu0 %v2377_v55 }
 0x1f5   :  { %2387 = vmatprep.subr.bf16.mxu0 %v2783_v0 }
 0x2b9   :  { %v965_v56 = vpop.f32.mrb[6].mxu0  ;;  %v1134_v57 = vpop.f32.mrb[4].mxu1 }
 0x2ba   :  { %v2193_v58 = vpop.f32.mrb[7].mxu0  ;;  %v2215_v59 = vpop.f32.mrb[5].mxu1  ;;  %v2418_v10 = vadd.f32 %v2417_v3, %v1134_v57  ;;  %v966_v20 = vadd.f32 %v1977_v18, %v965_v56 }
 0x2bc   :  { %v1986_v11 = vmul.f32 -1.442695, %v2418_v10 }
 0x2c1   :  { %v1051_v4 = vpop.f32.mrb[4].mxu0 }
 0x2c2   :  { %v2416_v5 = vadd.f32 %v2415_v2, %v1051_v4  ;;  %v2204_v6 = vpop.f32.mrb[5].mxu0  ;;  %v1217_v7 = vpop.f32.mrb[6].mxu1 }
 0x2c3   :  { %v2226_v8 = vpop.f32.mrb[7].mxu1  ;;  %v1218_v17 = vadd.f32 %v1983_v15, %v1217_v7 }
 0x2c4   :  { %v1985_v9 = vmul.f32 -1.442695, %v2416_v5 }
 0x2c6   :  { %2465 = vpow2.f32 %v1985_v9 }
 0x2c7   :  { %2467 = vpow2.f32 %v1986_v11 }
 0x2d0   :  { %v2466_v12 = vpop.eup %2465 }
 0x2d1   :  { %v1225_v13 = vadd.f32 1.0, %v2466_v12  ;;  %v2468_v14 = vpop.eup %2467 }
 0x2d2   :  { %v1232_v16 = vadd.f32 1.0, %v2468_v14  ;;  %v1248_v14 = vld [vmem:[%s3212_s4] sm:$0x3]  ;;  %s2787_s4 = smov [#allocation20]  }
 0x2d3   :  { %2469 = vrcp.f32 %v1225_v13  ;;  %s1933_s19 = sshll.u32 %s2787_s4, 4  ;;  %s1934_s19 = int_to_ptr.vmem [resolvable:$true] %s1933_s19 }
 0x2d4   :  { %2471 = vrcp.f32 %v1232_v16  ;;  %v2786_v16 = vmov 0   ;;  %s2707_s12 = scalar_lea.vmem %s1934_s19, 64  ;;  %p2712_p11 = scmp.lt.s32.totalorder %s1934_s19, %s1934_s19 }
 0x2d5   :  { %2453 = vset.pattern.permute.xlu1 %v2786_v16  ;;  %2454 = vset.pattern.permute.xlu0 %v2786_v16  ;;  %p2708_p10 = scmp.ne.s32.totalorder %s1934_s19, %s2707_s12  ;;  %p2713_p12 = scmp.lt.s32.totalorder %s2707_s12, %s2707_s12 }
 0x2d7   :  { %p2714_p13 = por %p2713_p12, %p2712_p11 }
 0x2d9   :  { %p2715_p0 = pnand %p2714_p13, %p2708_p10 }
 0x2dd   :  { %v2470_v19 = vpop.eup %2469 }
 0x2de   :  { %v1235_v21 = vmul.f32 %v2470_v19, %v1218_v17  ;;  %v2472_v23 = vpop.eup %2471 }
 0x2df   :  { %v1238_v24 = vsub.f32 1.0, %v2472_v23  ;;  %v1240_v27 = vmul.f32 %v2472_v23, %v3094_v42  ;;  %v1691_v42 = vld [vmem:[#allocation16] sm:$0xff] }
 0x2e0   :  { %v1236_v22 = vadd.f32 %v1235_v21, %v966_v20  ;;  %v2394_v45 = vpack.c.bf16 %v1692_v43, %v1691_v42  ;;  %v1687_v21 = vld [vmem:[#allocation14] sm:$0xff] }
 0x2e2   :  { %2473 = vtanh.f32 %v1236_v22  ;;  %v1688_v22 = vld [vmem:[#allocation14 + $0x8] sm:$0xff] }
 0x2e3   :  { %v2400_v23 = vpack.c.bf16 %v1688_v22, %v1687_v21 }
 0x2ec   :  { %v2474_v25 = vpop.eup %2473 }
 0x2ed   :  { %v1239_v26 = vmul.f32 %v2474_v25, %v1238_v24  ;;  %v1689_v24 = vld [vmem:[#allocation14 + $0x10] sm:$0xff]  ;;  %v1690_v25 = vld [vmem:[#allocation14 + $0x18] sm:$0xff] }
 0x2ef   :  { %v1241_v28 = vadd.f32 %v1240_v27, %v1239_v26  ;;  %v2403_v26 = vpack.c.bf16 %v1690_v25, %v1689_v24 }
 0x2f1   :  { %2236 = vmatmul.mubr.msk.f32.vlgmr.msra.gmra.mrb[8].mxu0 %vm202_vm1, %v1241_v28  ;;  %1243 = vst.msk [vmem:[#allocation20 + $0x2] sm:$0x3] %vm713_vm2, %v1241_v28 }
 0x2f2   :  { %2258 = vmatprep.mubr.msk.f32.mxu0 %vm2784_vm0, %v2785_v1 }
 0x3c4   :  { %v1333_v33 = vpop.f32.mrb[8].mxu0 }
 0x3c5   :  { %v1334_v36 = vadd.f32 %v1987_v30, %v1333_v33  ;;  %v2237_v37 = vpop.f32.mrb[9].mxu0  ;;  %v1840_v30 = vld [vmem:[#allocation17 + $0x8] sm:$0xff]  ;;  %v1842_v33 = vld [vmem:[#allocation17 + $0x18] sm:$0xff] }
 0x3c6   :  { %v2406_v32 = vpack.c.bf16 %v1840_v30, %v1839_v29  ;;  %v2409_v34 = vpack.c.bf16 %v1842_v33, %v1841_v31 }
 0x3c7   :  { %2238 = vmatprep.subr.msk.mxu1 %vm1344_vm4, %v1334_v36 }
 0x3c8   :  { %2239 = vmatpush3.msk.msra.mxu1 %vm1344_vm4, %v1334_v36 }
 0x3c9   :  { %2241 = vmatmul.mubr.msk.f32.vlgmr.msra.gmra.mrb[8].mxu1 %vm1337_vm3, %v1247_v39  ;;  %2380 = vmatprep.subr.bf16.mxu1 %v2379_v38 }
 0x3ca   :  { %2382 = vmatpush3.bf16.msra.mxu1 %v2379_v38  ;;  %2251 = vmatprep.mubr.msk.f32.mxu1 %vm202_vm1, %v1244_v41 }
 0x3cb   :  { %2384 = vmatprep.subr.bf16.mxu1 %v2383_v40 }
 0x3ce   :  { %2386 = vmatpush3.bf16.msra.mxu1 %v2383_v40 }
 0x3cf   :  { %2393 = vmatprep.subr.bf16.mxu1 %v2783_v0 }
 0x3d1   :  { %2252 = vmatmul.mubr.msk.f32.vlgmr.msra.gmra.mrb[8].mxu1 %vm202_vm1, %v1245_v44 }
 0x3d2   :  { %2395 = vmatpush3.bf16.msra.mxu1 %v2394_v45  ;;  %2276 = vmatprep.mubr.msk.f32.mxu1 %vm2784_vm0, %v2785_v1 }
 0x3d3   :  { %2396 = vmatprep.subr.bf16.mxu1 %v2783_v0 }
 0x3d6   :  { %2398 = vmatpush3.bf16.msra.mxu1 %v2397_v48 }
 0x3d7   :  { %2399 = vmatprep.subr.bf16.mxu1 %v2783_v0 }
 0x3d9   :  { %2277 = vmatmul.mubr.msk.f32.vlgmr.msra.gmra.mrb[10].mxu1 %vm202_vm1, %v1241_v28 }
 0x3da   :  { %2287 = vmatprep.mubr.msk.f32.mxu1 %vm2784_vm0, %v2785_v1  ;;  %2401 = vmatpush3.bf16.msra.mxu1 %v2400_v23 }
 0x3db   :  { %2402 = vmatprep.subr.bf16.mxu1 %v2783_v0 }
 0x3de   :  { %2404 = vmatpush3.bf16.msra.mxu1 %v2403_v26 }
 0x4a4   :  { %v2253_v49 = vpop.f32.mrb[8].mxu1 }
 0x4a5   :  { %2475 = vtanh.f32 %v2253_v49  ;;  %v1495_v50 = vpop.f32.mrb[9].mxu1 }
 0x4a6   :  { %2477 = vtanh.f32 %v1495_v50 }
 0x4af   :  { %v2476_v52 = vpop.eup %2475 }
 0x4b0   :  { %v2478_v53 = vpop.eup %2477  ;;  %v1514_v56 = vmul.f32 %v2476_v52, %v1994_v51 }
 0x4b1   :  { %v1513_v54 = vmul.f32 %v2478_v53, %v1994_v51 }
 0x4b2   :  { %v1518_v57 = vsel %vm202_vm1, %v1514_v56, 0.0 }
 0x4b3   :  { %v1515_v55 = vsel %vm202_vm1, %v1513_v54, 0.0 }
 0x4b4   :  { %1516 = vadd.xlane.f32.xlu0 %v1515_v55 }
 0x4b8   :  { %1519 = vadd.xlane.f32.xlu0 %v1518_v57 }
 0x541   :  { %v1517_v58 = vpop.xlane.xlu0 %1516 }
 0x545   :  { %v1520_v59 = vpop.xlane.xlu0 %1519 }
 0x546   :  { %v1521_v60 = vmax.f32 %v1517_v58, %v1520_v59 }
 0x548   :  { %v1522_v61 = vrot.slane %v1521_v60, 4 }
 0x54a   :  { %v1523_v62 = vmax.f32 %v1521_v60, %v1522_v61 }
 0x54c   :  { %v1524_v63 = vrot.slane %v1523_v62, 2 }
 0x54e   :  { %v1525_v2 = vmax.f32 %v1523_v62, %v1524_v63 }
 0x550   :  { %v1526_v3 = vrot.slane %v1525_v2, 1 }
 0x552   :  { %v1527_v4 = vmax.f32 %v1525_v2, %v1526_v3 }
 0x554   :  { %v1528_v5 = vsub.f32 %v1517_v58, %v1527_v4  ;;  %v1529_v6 = vsub.f32 %v1520_v59, %v1527_v4 }
 0x556   :  { %v1530_v7 = vmul.f32 1.442695, %v1528_v5  ;;  %v1532_v8 = vmul.f32 1.442695, %v1529_v6 }
 0x558   :  { %2479 = vpow2.f32 %v1530_v7 }
 0x559   :  { %2481 = vpow2.f32 %v1532_v8 }
 0x562   :  { %v2480_v9 = vpop.eup %2479 }
 0x563   :  { %v2482_v10 = vpop.eup %2481  ;;  %v1534_v11 = vmul.f32 %v2480_v9, %v1244_v41 }
 0x564   :  { %v1535_v12 = vmul.f32 %v2482_v10, %v1245_v44  ;;  %v2391_v15 = vpack.c.bf16 %v2482_v10, %v2480_v9 }
 0x566   :  { %v2388_v13 = vpack.c.bf16 %v1535_v12, %v1534_v11 }
 0x568   :  { %2389 = vmatpush3.bf16.msra.mxu0 %v2388_v13 }
 0x569   :  { %2390 = vmatprep.subr.bf16.mxu0 %v2783_v0 }
 0x56b   :  { %2259 = vmatmul.mubr.msk.f32.vlgmr.msra.gmra.mrb[10].mxu0 %vm1536_vm5, %v1248_v14 }
 0x56c   :  { %2392 = vmatpush3.bf16.msra.mxu0 %v2391_v15  ;;  %2265 = vmatprep.mubr.msk.f32.mxu0 %vm2784_vm0, %v2785_v1 }
 0x56d   :  { %2405 = vmatprep.subr.bf16.mxu0 %v2783_v0 }
 0x56f   :  { %2266 = vmatmul.mubr.msk.f32.vlgmr.msra.gmra.mrb[12].mxu0 %vm1536_vm5, %v1248_v14 }
 0x570   :  { %2298 = vmatprep.mubr.msk.f32.mxu0 %vm2784_vm0, %v2785_v1  ;;  %2407 = vmatpush3.bf16.msra.mxu0 %v2406_v32 }
 0x571   :  { %2408 = vmatprep.subr.bf16.mxu0 %v2783_v0 }
 0x574   :  { %2410 = vmatpush3.bf16.msra.mxu0 %v2409_v34 }
 0x63e   :  { %v1606_v17 = vpop.f32.mrb[10].mxu0 }
 0x63f   :  { %v2260_v18 = vpop.f32.mrb[11].mxu0 }
 0x642   :  { %v1676_v19 = vpop.f32.mrb[12].mxu0 }
 0x643   :  { %1682 = vperm.xlu1 %2453, %v1676_v19   ;;  %v2267_v20 = vpop.f32.mrb[13].mxu0 }
 0x6c2   :  { %v1683_v27 = vpop.permute.xlu1 %1682 }
 0x6c3   :  { %2483 = vrcp.f32 %v1683_v27 }
 0x6cd   :  { %v2484_v1 = vpop.eup %2483 }
 0x6ce   :  { %v1686_v28 = vmul.f32 %v2484_v1, %v1606_v17 }
 0x6d0   :  { %2288 = vmatmul.mubr.msk.f32.vlgmr.msra.gmra.mrb[10].mxu1 %vm202_vm1, %v1686_v28 }
 0x7a3   :  { %v1834_v35 = vpop.f32.mrb[10].mxu1 }
 0x7a4   :  { %2485 = vtanh.f32 %v1834_v35  ;;  %v2289_v36 = vpop.f32.mrb[11].mxu1 }
 0x7ae   :  { %v2486_v37 = vpop.eup %2485 }
 0x7af   :  { %2299 = vmatmul.mubr.msk.f32.vlgmr.msra.gmra.mrb[14].mxu0 %vm202_vm1, %v2486_v37 }
 0x7b0   :  { %2718 = shalt.err (!%p2715_p0)
}
 0x7b1   :  { %s2719_s21 = scalar_lea.hbm %s3225_s17, 64 }
 0x7b2   :  { %p2720_p1 = scmp.ne.s32.totalorder %s3225_s17, %s2719_s21  ;;  %p2723_p2 = scmp.lt.u32.totalorder %s2719_s21, %s3225_s17 }
 0x7b4   :  { %p2725_p3 = pnand %p2723_p2, %p2720_p1 }
 0x7b6   :  { %2728 = shalt.err (!%p2725_p3)
}
 0x7b7   :  { %1939 = dma.vmem_to_hbm [thread:$0]  %s1934_s19, 64, %s3225_s17, [#allocation21], %s2776_s13, %s2776_s13, %s2777_s29   ;;  %vm1916_vm6 = vcmask 517120  }
 0x7b8   :  { %s2788_s18 = smov [#allocation19]  }
 0x7b9   :  { %s1924_s20 = sshll.u32 %s2788_s18, 4  ;;  %s1925_s20 = int_to_ptr.vmem [resolvable:$true] %s1924_s20 }
 0x7ba   :  { %s2729_s14 = scalar_lea.vmem %s1925_s20, 32  ;;  %p2734_p5 = scmp.lt.s32.totalorder %s1925_s20, %s1925_s20 }
 0x7bb   :  { %p2730_p4 = scmp.ne.s32.totalorder %s1925_s20, %s2729_s14  ;;  %p2735_p6 = scmp.lt.s32.totalorder %s2729_s14, %s2729_s14 }
 0x7bd   :  { %p2736_p7 = por %p2735_p6, %p2734_p5 }
 0x7bf   :  { %p2737_p8 = pnand %p2736_p7, %p2730_p4 }
 0x882   :  { %v1912_v0 = vpop.f32.mrb[14].mxu0 }
 0x883   :  { %v2300_v38 = vpop.f32.mrb[15].mxu0  ;;  %1917 = vst.msk [vmem:[#allocation19] sm:$0x3] %vm1916_vm6, %v1912_v0 }
 0x884   :  { %2740 = shalt.err (!%p2737_p8)
}
 0x885   :  { %s2741_s7 = scalar_lea.hbm %s3224_s16, 32 }
 0x886   :  { %p2742_p9 = scmp.ne.s32.totalorder %s3224_s16, %s2741_s7  ;;  %p2745_p10 = scmp.lt.u32.totalorder %s2741_s7, %s3224_s16 }
 0x888   :  { %p2747_p11 = pnand %p2745_p10, %p2742_p9 }
 0x88a   :  { %2750 = shalt.err (!%p2747_p11)
}
 0x88b   :  { %1927 = dma.vmem_to_hbm [thread:$0]  %s1925_s20, 32, %s3224_s16, [#allocation4]  }
 0x88c   :  { %2763 = dma.done.wait [#allocation4], 32  }
 0x88d   :  { %2764 = vsyncadd [#allocation4], 4294967264 }
 0x88e   :  { %2765 = dma.done.wait [#allocation21], 64  }
 0x88f   :  { %2766 = vsyncadd [#allocation21], 4294967232 }
 0x890   :  { %1946 = vsyncpa [#allocation3], 1 }
 0x891   :  { %1947 = vsyncpa [#allocation6], 1 }
 0x892   :  { %1948 = vsyncpa [#allocation9], 1 }
 0x893   :  { %1949 = vsyncpa [#allocation12], 1 }
 0x894   :  { %1950 = vsyncpa [#allocation15], 1 }
 0x895   :  { %1951 = vsyncpa [#allocation18], 1 }
 0x896   :  { %1952 = vsyncpa [#allocation4], 1 }
 0x897   :  { %1953 = vsyncpa [#allocation21], 1 }

</bundles_post_ra>
